<compile_context>
chip_gen: v5e
topology: v5e:2x2
jax: 0.10.0
libtpu: 0.0.40
codegen_flags: <defaults>
</compile_context>

<pallas_src>
import functools

import jax
import jax.numpy as jnp
from jax.experimental import pallas as pl
from jax.experimental.pallas import tpu as pltpu


def _round_up(x, m):
    return ((x + m - 1) // m) * m


def _cdiv(a, b):
    return -(-a // b)


# ----------------------------------------------------------------------------
# Kernels
# ----------------------------------------------------------------------------
def _layers(h, b1_ref, w2_ref, b2_ref, w3_ref, b3_ref, out_ref):
    """Layers after the layer-1 dot (bias/activations in f32)."""
    h = h + b1_ref[...]
    h = jnp.maximum(h, 0.2 * h)               # LeakyReLU(0.2) as a single vmax

    h = jnp.dot(h.astype(w2_ref.dtype), w2_ref[...],
                preferred_element_type=jnp.float32)
    h = h + b2_ref[...]
    h = jnp.maximum(h, 0.2 * h)

    h = jnp.dot(h.astype(w3_ref.dtype), w3_ref[...],
                preferred_element_type=jnp.float32)
    h = h + b3_ref[...]
    out_ref[...] = jnp.tanh(h)                # f32, lane-dense (tb, Hp)


def _fold_kernel(x_ref, w1_ref, b1_ref, w2_ref, b2_ref, w3_ref, b3_ref, out_ref):
    # The L-sum is folded into w1 (rows repeated h-major), so one MXU dot both
    # reduces over L and applies the first Linear; accumulation stays f32 even
    # when the dot inputs are bf16.
    h = jnp.dot(x_ref[...].astype(w1_ref.dtype), w1_ref[...],
                preferred_element_type=jnp.float32)
    _layers(h, b1_ref, w2_ref, b2_ref, w3_ref, b3_ref, out_ref)


def _reduce_kernel(x_ref, w1_ref, b1_ref, w2_ref, b2_ref, w3_ref, b3_ref, out_ref):
    # In-kernel L pre-reduction accumulated in f32; cast to the MXU dtype only
    # for the matmul against the original (H, 256) w1 (keeps bf16 numerics
    # close to f32 — per review correctness note).
    xs = jnp.sum(x_ref[...].astype(jnp.float32), axis=-1)      # (tb, H)
    h = jnp.dot(xs.astype(w1_ref.dtype), w1_ref[...],
                preferred_element_type=jnp.float32)
    _layers(h, b1_ref, w2_ref, b2_ref, w3_ref, b3_ref, out_ref)


# ----------------------------------------------------------------------------
# One-time parameter prep (hoisted out of the per-call forward path)
# ----------------------------------------------------------------------------
def prepare_params(params, L, *, compute_dtype=jnp.bfloat16, mode="auto"):
    """Repeat/pad/cast the weights once.  Weights are stored (in, out)."""
    w1, b1, w2, b2, w3, b3 = params
    H = w1.shape[0]
    Hp = _round_up(H, 128)                    # lane-dense final matmul N / output
    itemsize = jnp.dtype(compute_dtype).itemsize

    if mode == "auto":
        # Fold the L-sum into w1 only while the replicated w1 stays small;
        # otherwise pre-reduce over L inside the kernel (w1 stays H x 256).
        mode = "fold" if H * L * 256 * itemsize <= 8 * 1024 * 1024 else "reduce"
    assert mode in ("fold", "reduce")

    if mode == "fold":
        # h-major x flattening (x.reshape(B, H*L))  =>  repeat rows, NOT tile.
        w1k = jnp.repeat(w1, L, axis=0).astype(compute_dtype)   # (H*L, 256)
    else:
        w1k = w1.astype(compute_dtype)                          # (H, 256)

    return dict(
        mode=mode, H=H, L=L, Hp=Hp, compute_dtype=jnp.dtype(compute_dtype),
        w1=w1k,
        b1=b1.reshape(1, 256).astype(jnp.float32),
        w2=w2.astype(compute_dtype),
        b2=b2.reshape(1, 512).astype(jnp.float32),
        w3=jnp.pad(w3, ((0, 0), (0, Hp - H))).astype(compute_dtype),
        b3=jnp.pad(b3.reshape(1, H), ((0, 0), (0, Hp - H))).astype(jnp.float32),
    )


# ----------------------------------------------------------------------------
# VMEM-aware tile selection
# ----------------------------------------------------------------------------
@functools.lru_cache(maxsize=1)
def _vmem_limit_bytes():
    # Per-TensorCore VMEM: 128 MiB on v5e/v6e, 64 MiB on v7x.  Query the chip
    # when possible; keep ~20% headroom for Mosaic internal scratch.
    cap = 64 * 1024 * 1024                    # v7x-safe fallback
    try:
        cap = int(pltpu.get_tpu_info().vmem_capacity_bytes)
    except Exception:
        pass
    return int(cap * 0.8)


def _pick_tb(B, x_row_bytes, Hp, weight_bytes, vmem_limit):
    # Budget: double-buffered x tile + double-buffered out tile + f32
    # activations, with resident weights (worst case double-buffered)
    # subtracted and 25% of the limit kept as slack for temporaries.
    per_row = 2 * x_row_bytes + 2 * Hp * 4 + (256 + 512 + Hp) * 4
    avail = int(vmem_limit * 0.75) - 2 * weight_bytes
    tb_max = min(1024, max(8, avail // max(per_row, 1)))
    if B <= tb_max:
        if B > 256:
            # Two grid steps: feeds both v7x TensorCores and overlaps DMA.
            return _round_up(_cdiv(B, 2), 8)
        return B                              # single pad-free tile (tb == B)
    cands = [t for t in (1024, 768, 512, 384, 256, 192, 128, 96, 64, 48, 32, 16, 8)
             if t <= tb_max]
    # Minimise wasted rows in the masked tail tile; prefer larger tiles on ties.
    return min(cands, key=lambda t: (_cdiv(B, t) * t - B, -t))


# ----------------------------------------------------------------------------
# Forward
# ----------------------------------------------------------------------------
def readnet_forward(x, prepped, *, tb=None):
    """ReadNet forward.  x: (B, H, L); `prepped` from prepare_params()."""
    H, L, Hp, mode = prepped["H"], prepped["L"], prepped["Hp"], prepped["mode"]
    B = x.shape[0]
    assert x.shape == (B, H, L), f"expected (B, {H}, {L}), got {x.shape}"

    w1, b1 = prepped["w1"], prepped["b1"]
    w2, b2 = prepped["w2"], prepped["b2"]
    w3, b3 = prepped["w3"], prepped["b3"]
    x_itemsize = x.dtype.itemsize
    w_itemsize = w1.dtype.itemsize

    if mode == "fold":
        K = H * L
        x_in = x.reshape(B, K)                # contiguous h-major reshape: free
        kernel = _fold_kernel
        x_row_bytes = _round_up(K, 128) * x_itemsize
        x_spec = lambda t: pl.BlockSpec((t, K), lambda i: (i, 0))
        w1_shape = (K, 256)
    else:
        x_in = x                              # (B, H, L) untouched
        kernel = _reduce_kernel
        x_row_bytes = _round_up(H, 8) * _round_up(L, 128) * x_itemsize
        x_spec = lambda t: pl.BlockSpec((t, H, L), lambda i: (i, 0, 0))
        w1_shape = w1.shape                   # (H, 256)

    weight_bytes = ((w1.size + w2.size + w3.size) * w_itemsize
                    + 8 * (256 + 512 + Hp) * 4)
    vmem_limit = _vmem_limit_bytes()
    if tb is None:
        tb = _pick_tb(B, x_row_bytes, Hp, weight_bytes, vmem_limit)
    grid = (_cdiv(B, tb),)

    # Real (unpadded / unreplicated) work for XLA's scheduling around the call.
    cost = pl.CostEstimate(
        flops=2 * B * (H * 256 + 256 * 512 + 512 * H) + B * H * L,
        transcendentals=B * H,
        bytes_accessed=int(x.size * x_itemsize
                           + (H * 256 + 256 * 512 + 512 * H) * w_itemsize
                           + (256 + 512 + H) * 4 + B * H * 4),
    )

    def run(single_buffer_weights):
        if single_buffer_weights:
            # Constant index_map => weights/biases are DMA'd once and stay
            # VMEM-resident; Buffered(1) keeps a single VMEM copy instead of
            # the default double buffer (frees VMEM for bigger batch tiles).
            def wspec(shape):
                return pl.BlockSpec(shape, lambda i: (0, 0),
                                    pipeline_mode=pl.Buffered(1))
        else:
            def wspec(shape):
                return pl.BlockSpec(shape, lambda i: (0, 0))

        return pl.pallas_call(
            kernel,
            out_shape=jax.ShapeDtypeStruct((B, Hp), jnp.float32),
            grid=grid,
            in_specs=[
                x_spec(tb),                   # pipelined / double-buffered
                wspec(w1_shape),
                wspec((1, 256)),
                wspec((256, 512)),
                wspec((1, 512)),
                wspec((512, Hp)),
                wspec((1, Hp)),
            ],
            out_specs=pl.BlockSpec((tb, Hp), lambda i: (i, 0)),
            compiler_params=pltpu.CompilerParams(
                dimension_semantics=("parallel",),   # megacore batch split
                vmem_limit_bytes=vmem_limit,
            ),
            cost_estimate=cost,
        )(x_in, w1, b1, w2, b2, w3, b3)

    try:
        out = run(True)
    except Exception:
        # Fallback for jax versions without BlockSpec.pipeline_mode /
        # Buffered(1): identical math, just double-buffered weight specs.
        out = run(False)

    return out[:, :H]


# ----------------------------------------------------------------------------
# Params / reference
# ----------------------------------------------------------------------------
def init_params(key, hsize):
    """PyTorch-style Linear init; weights stored transposed to (in, out)."""
    ks = jax.random.split(key, 6)

    def linear(kw, kb, fan_in, fan_out):
        bound = 1.0 / jnp.sqrt(fan_in)
        w = jax.random.uniform(kw, (fan_out, fan_in), jnp.float32, -bound, bound)
        b = jax.random.uniform(kb, (fan_out,), jnp.float32, -bound, bound)
        return w.T, b.reshape(1, fan_out)

    w1, b1 = linear(ks[0], ks[1], hsize, 256)
    w2, b2 = linear(ks[2], ks[3], 256, 512)
    w3, b3 = linear(ks[4], ks[5], 512, hsize)
    return w1, b1, w2, b2, w3, b3


def readnet_ref(x, w1, b1, w2, b2, w3, b3):
    """Pure-JAX reference for correctness checks."""
    h = jnp.sum(x, axis=-1)
    h = h @ w1 + b1
    h = jnp.where(h > 0, h, 0.2 * h)
    h = h @ w2 + b2
    h = jnp.where(h > 0, h, 0.2 * h)
    h = h @ w3 + b3
    return jnp.tanh(h)


if __name__ == "__main__":
    B, hsize, L = 2, 32, 8   # small shapes: batch=2, hidden=32, seq(last dim)=8

    key = jax.random.PRNGKey(0)
    kx, kp = jax.random.split(key)
    x = jax.random.normal(kx, (B, hsize, L), dtype=jnp.float32)
    params = init_params(kp, hsize)
    ref = readnet_ref(x, *params)

    # f32 fold path.  Tolerance is relaxed vs 1e-5 because the TPU MXU runs
    # f32 matmuls at reduced (bf16-decomposed) precision and the L-sum is
    # folded into the first matmul (different reduction order).
    prep_f32 = prepare_params(params, L, compute_dtype=jnp.float32)
    out = jax.block_until_ready(readnet_forward(x, prep_f32))
    assert out.shape == (B, hsize)
    assert jnp.allclose(out, ref, atol=2e-2, rtol=2e-2), "f32 fold kernel mismatch"

    # bf16 MXU-input path (all generations incl. v5e): bf16 dot inputs cast
    # in-kernel, f32 accumulate / bias / LeakyReLU / tanh.
    prep_bf16 = prepare_params(params, L, compute_dtype=jnp.bfloat16)
    out_bf16 = jax.block_until_ready(readnet_forward(x, prep_bf16))
    assert out_bf16.shape == (B, hsize)
    assert jnp.allclose(out_bf16, ref, atol=5e-2, rtol=5e-2), "bf16 kernel mismatch"

    # In-kernel L pre-reduction path (auto-selected when H*L is large;
    # forced here so it is exercised at small shapes too).
    prep_red = prepare_params(params, L, compute_dtype=jnp.float32, mode="reduce")
    out_red = jax.block_until_ready(readnet_forward(x, prep_red))
    assert jnp.allclose(out_red, ref, atol=2e-2, rtol=2e-2), "reduce kernel mismatch"

    # Masked tail tile: batch not a multiple of the tile, no HBM padding.
    B2 = 10
    x2 = jax.random.normal(jax.random.PRNGKey(1), (B2, hsize, L), dtype=jnp.float32)
    ref2 = readnet_ref(x2, *params)
    out2 = jax.block_until_ready(readnet_forward(x2, prep_f32, tb=8))
    assert out2.shape == (B2, hsize)
    assert jnp.allclose(out2, ref2, atol=2e-2, rtol=2e-2), "masked-tail mismatch"

    print("KERNEL_OK")
</pallas_src>

<mosaic_0001>
module attributes {stable_mosaic.version = 11 : i64} {
  func.func @_fold_kernel(%arg0: i32, %arg1: memref<2x256xf32, #tpu.memory_space<vmem>>, %arg2: memref<256x256xf32, #tpu.memory_space<vmem>>, %arg3: memref<1x256xf32, #tpu.memory_space<vmem>>, %arg4: memref<256x512xf32, #tpu.memory_space<vmem>>, %arg5: memref<1x512xf32, #tpu.memory_space<vmem>>, %arg6: memref<512x128xf32, #tpu.memory_space<vmem>>, %arg7: memref<1x128xf32, #tpu.memory_space<vmem>>, %arg8: memref<2x128xf32, #tpu.memory_space<vmem>>) attributes {dimension_semantics = [#tpu.dimension_semantics<parallel>], iteration_bounds = array<i64: 1>, scalar_prefetch = 0 : i64, scratch_operands = 0 : i64, tpu.core_type = #tpu.core_type<tc>, window_params = [{transform_indices = @transform_0, window_bounds = array<i64: 2, 256>}, {pipeline_mode = #tpu.pipeline_mode<synchronous>, transform_indices = @transform_1, window_bounds = array<i64: 256, 256>}, {pipeline_mode = #tpu.pipeline_mode<synchronous>, transform_indices = @transform_2, window_bounds = array<i64: 1, 256>}, {pipeline_mode = #tpu.pipeline_mode<synchronous>, transform_indices = @transform_3, window_bounds = array<i64: 256, 512>}, {pipeline_mode = #tpu.pipeline_mode<synchronous>, transform_indices = @transform_4, window_bounds = array<i64: 1, 512>}, {pipeline_mode = #tpu.pipeline_mode<synchronous>, transform_indices = @transform_5, window_bounds = array<i64: 512, 128>}, {pipeline_mode = #tpu.pipeline_mode<synchronous>, transform_indices = @transform_6, window_bounds = array<i64: 1, 128>}, {transform_indices = @transform_7, window_bounds = array<i64: 2, 128>}]} {
    %c0 = arith.constant 0 : index
    %c0_0 = arith.constant 0 : index
    %0 = vector.load %arg1[%c0, %c0_0] : memref<2x256xf32, #tpu.memory_space<vmem>>, vector<2x256xf32>
    %c0_1 = arith.constant 0 : index
    %c0_2 = arith.constant 0 : index
    %1 = vector.load %arg2[%c0_1, %c0_2] : memref<256x256xf32, #tpu.memory_space<vmem>>, vector<256x256xf32>
    %cst = arith.constant dense<0.000000e+00> : vector<2x256xf32>
    %2 = tpu.matmul %0, %1, %cst {dimension_numbers = #tpu.dot_dimension_numbers<[1], [0], [0], [1], [0, 0, 1, 1], [], []>} : vector<2x256xf32>, vector<256x256xf32>, vector<2x256xf32> -> vector<2x256xf32>
    %c0_3 = arith.constant 0 : index
    %c0_4 = arith.constant 0 : index
    %3 = vector.load %arg3[%c0_3, %c0_4] : memref<1x256xf32, #tpu.memory_space<vmem>>, vector<1x256xf32>
    %4 = vector.broadcast %3 : vector<1x256xf32> to vector<2x256xf32>
    %5 = arith.addf %2, %4 : vector<2x256xf32>
    %cst_5 = arith.constant 2.000000e-01 : f32
    %6 = vector.broadcast %cst_5 : f32 to vector<2x256xf32>
    %7 = arith.mulf %6, %5 : vector<2x256xf32>
    %8 = arith.maximumf %5, %7 : vector<2x256xf32>
    %c0_6 = arith.constant 0 : index
    %c0_7 = arith.constant 0 : index
    %9 = vector.load %arg4[%c0_6, %c0_7] : memref<256x512xf32, #tpu.memory_space<vmem>>, vector<256x512xf32>
    %cst_8 = arith.constant dense<0.000000e+00> : vector<2x512xf32>
    %10 = tpu.matmul %8, %9, %cst_8 {dimension_numbers = #tpu.dot_dimension_numbers<[1], [0], [0], [1], [0, 0, 1, 1], [], []>} : vector<2x256xf32>, vector<256x512xf32>, vector<2x512xf32> -> vector<2x512xf32>
    %c0_9 = arith.constant 0 : index
    %c0_10 = arith.constant 0 : index
    %11 = vector.load %arg5[%c0_9, %c0_10] : memref<1x512xf32, #tpu.memory_space<vmem>>, vector<1x512xf32>
    %12 = vector.broadcast %11 : vector<1x512xf32> to vector<2x512xf32>
    %13 = arith.addf %10, %12 : vector<2x512xf32>
    %cst_11 = arith.constant 2.000000e-01 : f32
    %14 = vector.broadcast %cst_11 : f32 to vector<2x512xf32>
    %15 = arith.mulf %14, %13 : vector<2x512xf32>
    %16 = arith.maximumf %13, %15 : vector<2x512xf32>
    %c0_12 = arith.constant 0 : index
    %c0_13 = arith.constant 0 : index
    %17 = vector.load %arg6[%c0_12, %c0_13] : memref<512x128xf32, #tpu.memory_space<vmem>>, vector<512x128xf32>
    %cst_14 = arith.constant dense<0.000000e+00> : vector<2x128xf32>
    %18 = tpu.matmul %16, %17, %cst_14 {dimension_numbers = #tpu.dot_dimension_numbers<[1], [0], [0], [1], [0, 0, 1, 1], [], []>} : vector<2x512xf32>, vector<512x128xf32>, vector<2x128xf32> -> vector<2x128xf32>
    %c0_15 = arith.constant 0 : index
    %c0_16 = arith.constant 0 : index
    %19 = vector.load %arg7[%c0_15, %c0_16] : memref<1x128xf32, #tpu.memory_space<vmem>>, vector<1x128xf32>
    %20 = vector.broadcast %19 : vector<1x128xf32> to vector<2x128xf32>
    %21 = arith.addf %18, %20 : vector<2x128xf32>
    %22 = math.tanh %21 : vector<2x128xf32>
    %c0_17 = arith.constant 0 : index
    %c0_18 = arith.constant 0 : index
    %23 = vector.load %arg8[%c0_17, %c0_18] : memref<2x128xf32, #tpu.memory_space<vmem>>, vector<2x128xf32>
    tpu.vector_store %arg8[%c0_17, %c0_18], %22 {strides = array<i32>} : memref<2x128xf32, #tpu.memory_space<vmem>>, vector<2x128xf32>,
    return
  }
  func.func @transform_0(%arg0: i32) -> (i32, i32) {
    %c0_i32 = arith.constant 0 : i32
    %c0_i32_0 = arith.constant 0 : i32
    return %arg0, %c0_i32 : i32, i32
  }
  func.func @transform_1(%arg0: i32) -> (i32, i32) {
    %c0_i32 = arith.constant 0 : i32
    %c0_i32_0 = arith.constant 0 : i32
    %c0_i32_1 = arith.constant 0 : i32
    return %c0_i32, %c0_i32_0 : i32, i32
  }
  func.func @transform_2(%arg0: i32) -> (i32, i32) {
    %c0_i32 = arith.constant 0 : i32
    %c0_i32_0 = arith.constant 0 : i32
    %c0_i32_1 = arith.constant 0 : i32
    return %c0_i32, %c0_i32_0 : i32, i32
  }
  func.func @transform_3(%arg0: i32) -> (i32, i32) {
    %c0_i32 = arith.constant 0 : i32
    %c0_i32_0 = arith.constant 0 : i32
    %c0_i32_1 = arith.constant 0 : i32
    return %c0_i32, %c0_i32_0 : i32, i32
  }
  func.func @transform_4(%arg0: i32) -> (i32, i32) {
    %c0_i32 = arith.constant 0 : i32
    %c0_i32_0 = arith.constant 0 : i32
    %c0_i32_1 = arith.constant 0 : i32
    return %c0_i32, %c0_i32_0 : i32, i32
  }
  func.func @transform_5(%arg0: i32) -> (i32, i32) {
    %c0_i32 = arith.constant 0 : i32
    %c0_i32_0 = arith.constant 0 : i32
    %c0_i32_1 = arith.constant 0 : i32
    return %c0_i32, %c0_i32_0 : i32, i32
  }
  func.func @transform_6(%arg0: i32) -> (i32, i32) {
    %c0_i32 = arith.constant 0 : i32
    %c0_i32_0 = arith.constant 0 : i32
    %c0_i32_1 = arith.constant 0 : i32
    return %c0_i32, %c0_i32_0 : i32, i32
  }
  func.func @transform_7(%arg0: i32) -> (i32, i32) {
    %c0_i32 = arith.constant 0 : i32
    %c0_i32_0 = arith.constant 0 : i32
    return %arg0, %c0_i32 : i32, i32
  }
}

module attributes {stable_mosaic.version = 11 : i64} {
  func.func @_fold_kernel(%arg0: i32, %arg1: memref<2x256xf32, #tpu.memory_space<vmem>>, %arg2: memref<256x256xf32, #tpu.memory_space<vmem>>, %arg3: memref<1x256xf32, #tpu.memory_space<vmem>>, %arg4: memref<256x512xf32, #tpu.memory_space<vmem>>, %arg5: memref<1x512xf32, #tpu.memory_space<vmem>>, %arg6: memref<512x128xf32, #tpu.memory_space<vmem>>, %arg7: memref<1x128xf32, #tpu.memory_space<vmem>>, %arg8: memref<2x128xf32, #tpu.memory_space<vmem>>) attributes {dimension_semantics = [#tpu.dimension_semantics<parallel>], iteration_bounds = array<i64: 1>, scalar_prefetch = 0 : i64, scratch_operands = 0 : i64, tpu.core_type = #tpu.core_type<tc>, window_params = [{transform_indices = @transform_0, window_bounds = array<i64: 2, 256>}, {pipeline_mode = #tpu.pipeline_mode<synchronous>, transform_indices = @transform_1, window_bounds = array<i64: 256, 256>}, {pipeline_mode = #tpu.pipeline_mode<synchronous>, transform_indices = @transform_2, window_bounds = array<i64: 1, 256>}, {pipeline_mode = #tpu.pipeline_mode<synchronous>, transform_indices = @transform_3, window_bounds = array<i64: 256, 512>}, {pipeline_mode = #tpu.pipeline_mode<synchronous>, transform_indices = @transform_4, window_bounds = array<i64: 1, 512>}, {pipeline_mode = #tpu.pipeline_mode<synchronous>, transform_indices = @transform_5, window_bounds = array<i64: 512, 128>}, {pipeline_mode = #tpu.pipeline_mode<synchronous>, transform_indices = @transform_6, window_bounds = array<i64: 1, 128>}, {transform_indices = @transform_7, window_bounds = array<i64: 2, 128>}]} {
    %c0 = arith.constant 0 : index
    %c0_0 = arith.constant 0 : index
    %0 = vector.load %arg1[%c0, %c0_0] : memref<2x256xf32, #tpu.memory_space<vmem>>, vector<2x256xf32>
    %c0_1 = arith.constant 0 : index
    %c0_2 = arith.constant 0 : index
    %1 = vector.load %arg2[%c0_1, %c0_2] : memref<256x256xf32, #tpu.memory_space<vmem>>, vector<256x256xf32>
    %cst = arith.constant dense<0.000000e+00> : vector<2x256xf32>
    %2 = tpu.matmul %0, %1, %cst {dimension_numbers = #tpu.dot_dimension_numbers<[1], [0], [0], [1], [0, 0, 1, 1], [], []>} : vector<2x256xf32>, vector<256x256xf32>, vector<2x256xf32> -> vector<2x256xf32>
    %c0_3 = arith.constant 0 : index
    %c0_4 = arith.constant 0 : index
    %3 = vector.load %arg3[%c0_3, %c0_4] : memref<1x256xf32, #tpu.memory_space<vmem>>, vector<1x256xf32>
    %4 = vector.broadcast %3 : vector<1x256xf32> to vector<2x256xf32>
    %5 = arith.addf %2, %4 : vector<2x256xf32>
    %cst_5 = arith.constant 2.000000e-01 : f32
    %6 = vector.broadcast %cst_5 : f32 to vector<2x256xf32>
    %7 = arith.mulf %6, %5 : vector<2x256xf32>
    %8 = arith.maximumf %5, %7 : vector<2x256xf32>
    %c0_6 = arith.constant 0 : index
    %c0_7 = arith.constant 0 : index
    %9 = vector.load %arg4[%c0_6, %c0_7] : memref<256x512xf32, #tpu.memory_space<vmem>>, vector<256x512xf32>
    %cst_8 = arith.constant dense<0.000000e+00> : vector<2x512xf32>
    %10 = tpu.matmul %8, %9, %cst_8 {dimension_numbers = #tpu.dot_dimension_numbers<[1], [0], [0], [1], [0, 0, 1, 1], [], []>} : vector<2x256xf32>, vector<256x512xf32>, vector<2x512xf32> -> vector<2x512xf32>
    %c0_9 = arith.constant 0 : index
    %c0_10 = arith.constant 0 : index
    %11 = vector.load %arg5[%c0_9, %c0_10] : memref<1x512xf32, #tpu.memory_space<vmem>>, vector<1x512xf32>
    %12 = vector.broadcast %11 : vector<1x512xf32> to vector<2x512xf32>
    %13 = arith.addf %10, %12 : vector<2x512xf32>
    %cst_11 = arith.constant 2.000000e-01 : f32
    %14 = vector.broadcast %cst_11 : f32 to vector<2x512xf32>
    %15 = arith.mulf %14, %13 : vector<2x512xf32>
    %16 = arith.maximumf %13, %15 : vector<2x512xf32>
    %c0_12 = arith.constant 0 : index
    %c0_13 = arith.constant 0 : index
    %17 = vector.load %arg6[%c0_12, %c0_13] : memref<512x128xf32, #tpu.memory_space<vmem>>, vector<512x128xf32>
    %cst_14 = arith.constant dense<0.000000e+00> : vector<2x128xf32>
    %18 = tpu.matmul %16, %17, %cst_14 {dimension_numbers = #tpu.dot_dimension_numbers<[1], [0], [0], [1], [0, 0, 1, 1], [], []>} : vector<2x512xf32>, vector<512x128xf32>, vector<2x128xf32> -> vector<2x128xf32>
    %c0_15 = arith.constant 0 : index
    %c0_16 = arith.constant 0 : index
    %19 = vector.load %arg7[%c0_15, %c0_16] : memref<1x128xf32, #tpu.memory_space<vmem>>, vector<1x128xf32>
    %20 = vector.broadcast %19 : vector<1x128xf32> to vector<2x128xf32>
    %21 = arith.addf %18, %20 : vector<2x128xf32>
    %22 = math.tanh %21 : vector<2x128xf32>
    %c0_17 = arith.constant 0 : index
    %c0_18 = arith.constant 0 : index
    %23 = vector.load %arg8[%c0_17, %c0_18] : memref<2x128xf32, #tpu.memory_space<vmem>>, vector<2x128xf32>
    tpu.vector_store %arg8[%c0_17, %c0_18], %22 {strides = array<i32>} : memref<2x128xf32, #tpu.memory_space<vmem>>, vector<2x128xf32>,
    return
  }
  func.func @transform_0(%arg0: i32) -> (i32, i32) {
    %c0_i32 = arith.constant 0 : i32
    %c0_i32_0 = arith.constant 0 : i32
    return %arg0, %c0_i32 : i32, i32
  }
  func.func @transform_1(%arg0: i32) -> (i32, i32) {
    %c0_i32 = arith.constant 0 : i32
    %c0_i32_0 = arith.constant 0 : i32
    %c0_i32_1 = arith.constant 0 : i32
    return %c0_i32, %c0_i32_0 : i32, i32
  }
  func.func @transform_2(%arg0: i32) -> (i32, i32) {
    %c0_i32 = arith.constant 0 : i32
    %c0_i32_0 = arith.constant 0 : i32
    %c0_i32_1 = arith.constant 0 : i32
    return %c0_i32, %c0_i32_0 : i32, i32
  }
  func.func @transform_3(%arg0: i32) -> (i32, i32) {
    %c0_i32 = arith.constant 0 : i32
    %c0_i32_0 = arith.constant 0 : i32
    %c0_i32_1 = arith.constant 0 : i32
    return %c0_i32, %c0_i32_0 : i32, i32
  }
  func.func @transform_4(%arg0: i32) -> (i32, i32) {
    %c0_i32 = arith.constant 0 : i32
    %c0_i32_0 = arith.constant 0 : i32
    %c0_i32_1 = arith.constant 0 : i32
    return %c0_i32, %c0_i32_0 : i32, i32
  }
  func.func @transform_5(%arg0: i32) -> (i32, i32) {
    %c0_i32 = arith.constant 0 : i32
    %c0_i32_0 = arith.constant 0 : i32
    %c0_i32_1 = arith.constant 0 : i32
    return %c0_i32, %c0_i32_0 : i32, i32
  }
  func.func @transform_6(%arg0: i32) -> (i32, i32) {
    %c0_i32 = arith.constant 0 : i32
    %c0_i32_0 = arith.constant 0 : i32
    %c0_i32_1 = arith.constant 0 : i32
    return %c0_i32, %c0_i32_0 : i32, i32
  }
  func.func @transform_7(%arg0: i32) -> (i32, i32) {
    %c0_i32 = arith.constant 0 : i32
    %c0_i32_0 = arith.constant 0 : i32
    return %arg0, %c0_i32 : i32, i32
  }
}

</mosaic_0001>

<bundles_post_ra>
// kernel: tpu_custom_call.1
= control target key start
LH: loop header
LB: loop body
LE: loop exit
PB: predicated region body
PF: predicated region fallthrough
CT: control target
= control target key end

     0   :  { %12 = vsyncpa [#allocation3], 0  ;;  %s1023_s0 = inlined_call_operand.hbm [shape: f32[2,256], index: 0, kind: input, shape index: {}]   ;;  %s1024_s1 = inlined_call_operand.hbm [shape: f32[256,256], index: 1, kind: input, shape index: {}]   ;;  %s1025_s2 = inlined_call_operand.hbm [shape: f32[1,256], index: 2, kind: input, shape index: {}]   ;;  %s1026_s3 = inlined_call_operand.hbm [shape: f32[256,512], index: 3, kind: input, shape index: {}]   ;;  %s1027_s4 = inlined_call_operand.hbm [shape: f32[1,512], index: 4, kind: input, shape index: {}]   ;;  %s1028_s5 = inlined_call_operand.hbm [shape: f32[512,128], index: 5, kind: input, shape index: {}]   ;;  %s1029_s6 = inlined_call_operand.vmem [shape: f32[1,128], index: 6, kind: input, shape index: {}]   ;;  %s1030_s7 = inlined_call_operand.hbm [shape: f32[2,128], index: 7, kind: output, shape index: {}]  }
   0x1   :  { %13 = vsyncpa [#allocation6], 0 }
   0x2   :  { %14 = vsyncpa [#allocation9], 0 }
   0x3   :  { %15 = vsyncpa [#allocation12], 0  ;;  %s32_s26 = sshll.u32 %s1024_s1, 4  ;;  %s33_s26 = int_to_ptr.hbm [resolvable:$true] %s32_s26 }
   0x4   :  { %16 = vsyncpa [#allocation4], 0  ;;  %s946_s27 = smov [#allocation5]   ;;  %s56_s8 = sshll.u32 %s1026_s3, 4  ;;  %s57_s8 = int_to_ptr.hbm [resolvable:$true] %s56_s8 }
   0x5   :  { %s34_s28 = sshll.u32 %s946_s27, 4  ;;  %s947_s9 = smov 256   ;;  %s35_s28 = int_to_ptr.vmem [resolvable:$true] %s34_s28 }
   0x6   :  { %s948_s10 = smov 16   ;;  %s949_s11 = smov [#allocation8]  }
   0x7   :  { %40 = dma.hbm_to_vmem [thread:$0]  %s33_s26, 8192, %s35_s28, [#allocation6], %s947_s9, %s947_s9, %s948_s10  }
   0x8   :  { %s58_s12 = sshll.u32 %s949_s11, 4  ;;  %s950_s13 = smov 512   ;;  %s59_s12 = int_to_ptr.vmem [resolvable:$true] %s58_s12 }
   0x9   :  { %s951_s14 = smov 32   ;;  %s22_s16 = sshll.u32 %s1023_s0, 4  ;;  %s23_s16 = int_to_ptr.hbm [resolvable:$true] %s22_s16 }
   0xa   :  { %64 = dma.hbm_to_vmem [thread:$0]  %s57_s8, 16384, %s59_s12, [#allocation9], %s950_s13, %s950_s13, %s951_s14  }
   0xb   :  { %s952_s17 = smov [#allocation2]   ;;  %s46_s20 = sshll.u32 %s1025_s2, 4  ;;  %s47_s20 = int_to_ptr.hbm [resolvable:$true] %s46_s20 }
   0xc   :  { %s24_s18 = sshll.u32 %s952_s17, 4  ;;  %s953_s21 = smov [#allocation7]   ;;  %s25_s18 = int_to_ptr.vmem [resolvable:$true] %s24_s18 }
   0xd   :  { %27 = dma.hbm_to_vmem [thread:$0]  %s23_s16, 64, %s25_s18, [#allocation3]  }
   0xe   :  { %s48_s22 = sshll.u32 %s953_s21, 4  ;;  %s70_s25 = sshll.u32 %s1027_s4, 4  ;;  %s49_s22 = int_to_ptr.vmem [resolvable:$true] %s48_s22  ;;  %s71_s25 = int_to_ptr.hbm [resolvable:$true] %s70_s25 }
   0xf   :  { %51 = dma.hbm_to_vmem [thread:$0]  %s47_s20, 32, %s49_s22, [#allocation6]  }
  0x10   :  { %s80_s27 = sshll.u32 %s1028_s5, 4  ;;  %s954_s28 = smov [#allocation10]   ;;  %s81_s27 = int_to_ptr.hbm [resolvable:$true] %s80_s27 }
  0x11   :  { %s72_s29 = sshll.u32 %s954_s28, 4  ;;  %s955_s2 = smov [#allocation11]   ;;  %s73_s29 = int_to_ptr.vmem [resolvable:$true] %s72_s29 }
  0x12   :  { %75 = dma.hbm_to_vmem [thread:$0]  %s71_s25, 64, %s73_s29, [#allocation9]  }
  0x13   :  { %s82_s30 = sshll.u32 %s955_s2, 4  ;;  %s956_s8 = smov 128   ;;  %s83_s30 = int_to_ptr.vmem [resolvable:$true] %s82_s30 }
  0x14   :  { %s957_s9 = smov 8  }
  0x15   :  { %88 = dma.hbm_to_vmem [thread:$0]  %s81_s27, 8192, %s83_s30, [#allocation12], %s956_s8, %s956_s8, %s957_s9  }
  0x16   :  { %936 = dma.done.wait [#allocation3], 64  }
  0x17   :  { %937 = vsyncadd [#allocation3], 4294967232 }
  0x18   :  { %938 = dma.done.wait [#allocation6], 8224  }
  0x19   :  { %939 = vsyncadd [#allocation6], 4294959072 }
  0x1a   :  { %940 = dma.done.wait [#allocation9], 16448  }
  0x1b   :  { %941 = vsyncadd [#allocation9], 4294950848 }
  0x1c   :  { %942 = dma.done.wait [#allocation12], 8192  }
  0x1d   :  { %943 = vsyncadd [#allocation12], 4294959104  ;;  %v146_v0 = vld [vmem:[#allocation5 + $0xf0] sm:$0xff]  ;;  %v147_v1 = vld [vmem:[#allocation5 + $0xf8] sm:$0xff]  ;;  %s958_s10 = smov [#allocation13]   ;;  %s739_s14 = sshll.u32 %s1030_s7, 4  ;;  %s740_s14 = int_to_ptr.hbm [resolvable:$true] %s739_s14 }
  0x1e   :  { %v144_v2 = vld [vmem:[#allocation5 + $0xe0] sm:$0xff]  ;;  %192 = vmatpush.msra.mxu0 %v146_v0  ;;  %232 = vmatpush.msra.mxu2 %v147_v1  ;;  %v178_v3 = vld [vmem:[#allocation5 + $0x1f0] sm:$0xff]  ;;  %v145_v4 = vld [vmem:[#allocation5 + $0xe8] sm:$0xff]  ;;  %s737_s11 = sshll.u32 %s958_s10, 4  ;;  %s738_s11 = int_to_ptr.vmem [resolvable:$true] %s737_s11 }
  0x1f   :  { %v179_v5 = vld [vmem:[#allocation5 + $0x1f8] sm:$0xff]  ;;  %212 = vmatpush.msra.mxu1 %v178_v3  ;;  %v142_v6 = vld [vmem:[#allocation5 + $0xd0] sm:$0xff]  ;;  %v176_v7 = vld [vmem:[#allocation5 + $0x1e0] sm:$0xff] }
  0x20   :  { %252 = vmatpush.msra.mxu3 %v179_v5  ;;  %v143_v8 = vld [vmem:[#allocation5 + $0xd8] sm:$0xff]  ;;  %193 = vmatpush.msra.mxu0 %v144_v2  ;;  %v177_v9 = vld [vmem:[#allocation5 + $0x1e8] sm:$0xff]  ;;  %v174_v10 = vld [vmem:[#allocation5 + $0x1d0] sm:$0xff] }
  0x21   :  { %233 = vmatpush.msra.mxu2 %v145_v4  ;;  %213 = vmatpush.msra.mxu1 %v176_v7  ;;  %v140_v11 = vld [vmem:[#allocation5 + $0xc0] sm:$0xff]  ;;  %v141_v12 = vld [vmem:[#allocation5 + $0xc8] sm:$0xff]  ;;  %v175_v13 = vld [vmem:[#allocation5 + $0x1d8] sm:$0xff] }
  0x22   :  { %253 = vmatpush.msra.mxu3 %v177_v9  ;;  %194 = vmatpush.msra.mxu0 %v142_v6  ;;  %v172_v14 = vld [vmem:[#allocation5 + $0x1c0] sm:$0xff]  ;;  %v173_v15 = vld [vmem:[#allocation5 + $0x1c8] sm:$0xff]  ;;  %v138_v16 = vld [vmem:[#allocation5 + $0xb0] sm:$0xff] }
  0x23   :  { %234 = vmatpush.msra.mxu2 %v143_v8  ;;  %214 = vmatpush.msra.mxu1 %v174_v10  ;;  %v139_v17 = vld [vmem:[#allocation5 + $0xb8] sm:$0xff]  ;;  %v170_v18 = vld [vmem:[#allocation5 + $0x1b0] sm:$0xff]  ;;  %v136_v20 = vld [vmem:[#allocation5 + $0xa0] sm:$0xff] }
  0x24   :  { %254 = vmatpush.msra.mxu3 %v175_v13  ;;  %195 = vmatpush.msra.mxu0 %v140_v11  ;;  %v171_v19 = vld [vmem:[#allocation5 + $0x1b8] sm:$0xff]  ;;  %v137_v21 = vld [vmem:[#allocation5 + $0xa8] sm:$0xff]  ;;  %v168_v22 = vld [vmem:[#allocation5 + $0x1a0] sm:$0xff] }
  0x25   :  { %235 = vmatpush.msra.mxu2 %v141_v12  ;;  %215 = vmatpush.msra.mxu1 %v172_v14  ;;  %v169_v23 = vld [vmem:[#allocation5 + $0x1a8] sm:$0xff]  ;;  %v134_v24 = vld [vmem:[#allocation5 + $0x90] sm:$0xff]  ;;  %v135_v25 = vld [vmem:[#allocation5 + $0x98] sm:$0xff] }
  0x26   :  { %255 = vmatpush.msra.mxu3 %v173_v15  ;;  %196 = vmatpush.msra.mxu0 %v138_v16  ;;  %v166_v26 = vld [vmem:[#allocation5 + $0x190] sm:$0xff]  ;;  %v167_v27 = vld [vmem:[#allocation5 + $0x198] sm:$0xff]  ;;  %v132_v28 = vld [vmem:[#allocation5 + $0x80] sm:$0xff] }
  0x27   :  { %236 = vmatpush.msra.mxu2 %v139_v17  ;;  %216 = vmatpush.msra.mxu1 %v170_v18  ;;  %v133_v29 = vld [vmem:[#allocation5 + $0x88] sm:$0xff]  ;;  %v164_v30 = vld [vmem:[#allocation5 + $0x180] sm:$0xff]  ;;  %v130_v32 = vld [vmem:[#allocation5 + $0x70] sm:$0xff] }
  0x28   :  { %256 = vmatpush.msra.mxu3 %v171_v19  ;;  %197 = vmatpush.msra.mxu0 %v136_v20  ;;  %v165_v31 = vld [vmem:[#allocation5 + $0x188] sm:$0xff]  ;;  %v131_v33 = vld [vmem:[#allocation5 + $0x78] sm:$0xff]  ;;  %v162_v34 = vld [vmem:[#allocation5 + $0x170] sm:$0xff] }
  0x29   :  { %237 = vmatpush.msra.mxu2 %v137_v21  ;;  %217 = vmatpush.msra.mxu1 %v168_v22  ;;  %v163_v35 = vld [vmem:[#allocation5 + $0x178] sm:$0xff]  ;;  %v128_v36 = vld [vmem:[#allocation5 + $0x60] sm:$0xff]  ;;  %v129_v37 = vld [vmem:[#allocation5 + $0x68] sm:$0xff] }
  0x2a   :  { %257 = vmatpush.msra.mxu3 %v169_v23  ;;  %198 = vmatpush.msra.mxu0 %v134_v24  ;;  %v160_v38 = vld [vmem:[#allocation5 + $0x160] sm:$0xff]  ;;  %v161_v39 = vld [vmem:[#allocation5 + $0x168] sm:$0xff]  ;;  %v126_v40 = vld [vmem:[#allocation5 + $0x50] sm:$0xff] }
  0x2b   :  { %238 = vmatpush.msra.mxu2 %v135_v25  ;;  %218 = vmatpush.msra.mxu1 %v166_v26  ;;  %v127_v41 = vld [vmem:[#allocation5 + $0x58] sm:$0xff]  ;;  %v158_v42 = vld [vmem:[#allocation5 + $0x150] sm:$0xff]  ;;  %v124_v44 = vld [vmem:[#allocation5 + $0x40] sm:$0xff] }
  0x2c   :  { %258 = vmatpush.msra.mxu3 %v167_v27  ;;  %199 = vmatpush.msra.mxu0 %v132_v28  ;;  %v159_v43 = vld [vmem:[#allocation5 + $0x158] sm:$0xff]  ;;  %v125_v45 = vld [vmem:[#allocation5 + $0x48] sm:$0xff]  ;;  %v156_v47 = vld [vmem:[#allocation5 + $0x140] sm:$0xff] }
  0x2d   :  { %239 = vmatpush.msra.mxu2 %v133_v29  ;;  %219 = vmatpush.msra.mxu1 %v164_v30  ;;  %v115_v46 = vld [vmem:[#allocation2] sm:$0xf]  ;;  %v157_v48 = vld [vmem:[#allocation5 + $0x148] sm:$0xff]  ;;  %v122_v49 = vld [vmem:[#allocation5 + $0x30] sm:$0xff] }
  0x2e   :  { %259 = vmatpush.msra.mxu3 %v165_v31  ;;  %200 = vmatpush.msra.mxu0 %v130_v32  ;;  %187 = vst [vmem:[#allocation1] ss:$4 sm:$0xff] %v115_v46  ;;  %v123_v50 = vld [vmem:[#allocation5 + $0x38] sm:$0xff]  ;;  %v154_v51 = vld [vmem:[#allocation5 + $0x130] sm:$0xff]  ;;  %v120_v53 = vld [vmem:[#allocation5 + $0x20] sm:$0xff] }
  0x2f   :  { %240 = vmatpush.msra.mxu2 %v131_v33  ;;  %220 = vmatpush.msra.mxu1 %v162_v34  ;;  %v155_v52 = vld [vmem:[#allocation5 + $0x138] sm:$0xff]  ;;  %v121_v54 = vld [vmem:[#allocation5 + $0x28] sm:$0xff]  ;;  %v152_v55 = vld [vmem:[#allocation5 + $0x120] sm:$0xff] }
  0x30   :  { %260 = vmatpush.msra.mxu3 %v163_v35  ;;  %201 = vmatpush.msra.mxu0 %v128_v36  ;;  %v153_v56 = vld [vmem:[#allocation5 + $0x128] sm:$0xff]  ;;  %v118_v57 = vld [vmem:[#allocation5 + $0x10] sm:$0xff]  ;;  %v119_v58 = vld [vmem:[#allocation5 + $0x18] sm:$0xff] }
  0x31   :  { %241 = vmatpush.msra.mxu2 %v129_v37  ;;  %221 = vmatpush.msra.mxu1 %v160_v38  ;;  %v150_v59 = vld [vmem:[#allocation5 + $0x110] sm:$0xff]  ;;  %v151_v60 = vld [vmem:[#allocation5 + $0x118] sm:$0xff]  ;;  %v116_v61 = vld [vmem:[#allocation5] sm:$0xff] }
  0x32   :  { %261 = vmatpush.msra.mxu3 %v161_v39  ;;  %202 = vmatpush.msra.mxu0 %v126_v40  ;;  %v117_v62 = vld [vmem:[#allocation5 + $0x8] sm:$0xff]  ;;  %v148_v0 = vld [vmem:[#allocation5 + $0x100] sm:$0xff] }
  0x33   :  { %242 = vmatpush.msra.mxu2 %v127_v41  ;;  %222 = vmatpush.msra.mxu1 %v158_v42  ;;  %v149_v1 = vld [vmem:[#allocation5 + $0x108] sm:$0xff] }
  0x34   :  { %262 = vmatpush.msra.mxu3 %v159_v43  ;;  %203 = vmatpush.msra.mxu0 %v124_v44  ;;  %v336_v3 = vld [vmem:[#allocation8 + $0x1e0] sm:$0xff]  ;;  %v337_v4 = vld [vmem:[#allocation8 + $0x1e8] sm:$0xff] }
  0x35   :  { %243 = vmatpush.msra.mxu2 %v125_v45  ;;  %223 = vmatpush.msra.mxu1 %v156_v47  ;;  %v188_v63 = vld.sshfl [vmem:[#allocation1] sm:$0xff pattern:$0x73625140]  ;;  %v189_v2 = vld.sshfl [vmem:[#allocation1 + $0x8] sm:$0xff pattern:$0x73625140] }
  0x36   :  { %263 = vmatpush.msra.mxu3 %v157_v48  ;;  %204 = vmatpush.msra.mxu0 %v122_v49  ;;  %v400_v5 = vld [vmem:[#allocation8 + $0x3e0] sm:$0xff]  ;;  %v401_v6 = vld [vmem:[#allocation8 + $0x3e8] sm:$0xff] }
  0x37   :  { %244 = vmatpush.msra.mxu2 %v123_v50  ;;  %224 = vmatpush.msra.mxu1 %v154_v51  ;;  %v332_v7 = vld [vmem:[#allocation8 + $0x1c0] sm:$0xff]  ;;  %v333_v8 = vld [vmem:[#allocation8 + $0x1c8] sm:$0xff] }
  0x38   :  { %264 = vmatpush.msra.mxu3 %v155_v52  ;;  %205 = vmatpush.msra.mxu0 %v120_v53  ;;  %v396_v9 = vld [vmem:[#allocation8 + $0x3c0] sm:$0xff]  ;;  %v397_v10 = vld [vmem:[#allocation8 + $0x3c8] sm:$0xff] }
  0x39   :  { %245 = vmatpush.msra.mxu2 %v121_v54  ;;  %225 = vmatpush.msra.mxu1 %v152_v55  ;;  %v328_v11 = vld [vmem:[#allocation8 + $0x1a0] sm:$0xff]  ;;  %v329_v12 = vld [vmem:[#allocation8 + $0x1a8] sm:$0xff] }
  0x3a   :  { %265 = vmatpush.msra.mxu3 %v153_v56  ;;  %206 = vmatpush.msra.mxu0 %v118_v57  ;;  %v392_v13 = vld [vmem:[#allocation8 + $0x3a0] sm:$0xff]  ;;  %v393_v14 = vld [vmem:[#allocation8 + $0x3a8] sm:$0xff] }
  0x3b   :  { %246 = vmatpush.msra.mxu2 %v119_v58  ;;  %226 = vmatpush.msra.mxu1 %v150_v59  ;;  %v324_v15 = vld [vmem:[#allocation8 + $0x180] sm:$0xff]  ;;  %v325_v16 = vld [vmem:[#allocation8 + $0x188] sm:$0xff] }
  0x3c   :  { %266 = vmatpush.msra.mxu3 %v151_v60  ;;  %207 = vmatpush.msra.mxu0 %v116_v61  ;;  %v388_v17 = vld [vmem:[#allocation8 + $0x380] sm:$0xff]  ;;  %v389_v18 = vld [vmem:[#allocation8 + $0x388] sm:$0xff] }
  0x3d   :  { %247 = vmatpush.msra.mxu2 %v117_v62  ;;  %208 = vmatmul.f32.vlgmr.msra.gmra.mxu0 %v188_v63  ;;  %v320_v19 = vld [vmem:[#allocation8 + $0x160] sm:$0xff]  ;;  %v321_v20 = vld [vmem:[#allocation8 + $0x168] sm:$0xff] }
  0x3e   :  { %248 = vmatmul.f32.vlgmr.msra.gmra.mxu2 %v188_v63  ;;  %227 = vmatpush.msra.mxu1 %v148_v0  ;;  %v384_v21 = vld [vmem:[#allocation8 + $0x360] sm:$0xff]  ;;  %v385_v22 = vld [vmem:[#allocation8 + $0x368] sm:$0xff] }
  0x3f   :  { %267 = vmatpush.msra.mxu3 %v149_v1  ;;  %228 = vmatmul.f32.vlgmr.msra.gmra.mxu1 %v189_v2  ;;  %v316_v23 = vld [vmem:[#allocation8 + $0x140] sm:$0xff]  ;;  %v317_v24 = vld [vmem:[#allocation8 + $0x148] sm:$0xff]  ;;  %v338_v1 = vld [vmem:[#allocation8 + $0x1f0] sm:$0xff] }
  0x40   :  { %268 = vmatmul.f32.vlgmr.msra.gmra.mxu3 %v189_v2  ;;  %414 = vmatpush.msrb.mxu0 %v336_v3  ;;  %v380_v25 = vld [vmem:[#allocation8 + $0x340] sm:$0xff]  ;;  %v381_v26 = vld [vmem:[#allocation8 + $0x348] sm:$0xff]  ;;  %v339_v2 = vld [vmem:[#allocation8 + $0x1f8] sm:$0xff] }
  0x41   :  { %454 = vmatpush.msrb.mxu2 %v337_v4  ;;  %434 = vmatpush.msrb.mxu1 %v400_v5  ;;  %v312_v27 = vld [vmem:[#allocation8 + $0x120] sm:$0xff]  ;;  %v313_v28 = vld [vmem:[#allocation8 + $0x128] sm:$0xff]  ;;  %v334_v5 = vld [vmem:[#allocation8 + $0x1d0] sm:$0xff] }
  0x42   :  { %474 = vmatpush.msrb.mxu3 %v401_v6  ;;  %415 = vmatpush.msrb.mxu0 %v332_v7  ;;  %v376_v29 = vld [vmem:[#allocation8 + $0x320] sm:$0xff]  ;;  %v377_v30 = vld [vmem:[#allocation8 + $0x328] sm:$0xff]  ;;  %v335_v6 = vld [vmem:[#allocation8 + $0x1d8] sm:$0xff] }
  0x43   :  { %455 = vmatpush.msrb.mxu2 %v333_v8  ;;  %435 = vmatpush.msrb.mxu1 %v396_v9  ;;  %v308_v31 = vld [vmem:[#allocation8 + $0x100] sm:$0xff]  ;;  %v309_v32 = vld [vmem:[#allocation8 + $0x108] sm:$0xff]  ;;  %v402_v7 = vld [vmem:[#allocation8 + $0x3f0] sm:$0xff] }
  0x44   :  { %475 = vmatpush.msrb.mxu3 %v397_v10  ;;  %416 = vmatpush.msrb.mxu0 %v328_v11  ;;  %v372_v33 = vld [vmem:[#allocation8 + $0x300] sm:$0xff]  ;;  %v373_v34 = vld [vmem:[#allocation8 + $0x308] sm:$0xff]  ;;  %v403_v8 = vld [vmem:[#allocation8 + $0x3f8] sm:$0xff] }
  0x45   :  { %456 = vmatpush.msrb.mxu2 %v329_v12  ;;  %436 = vmatpush.msrb.mxu1 %v392_v13  ;;  %v304_v35 = vld [vmem:[#allocation8 + $0xe0] sm:$0xff]  ;;  %v305_v36 = vld [vmem:[#allocation8 + $0xe8] sm:$0xff]  ;;  %v330_v9 = vld [vmem:[#allocation8 + $0x1b0] sm:$0xff] }
  0x46   :  { %476 = vmatpush.msrb.mxu3 %v393_v14  ;;  %417 = vmatpush.msrb.mxu0 %v324_v15  ;;  %v368_v37 = vld [vmem:[#allocation8 + $0x2e0] sm:$0xff]  ;;  %v369_v38 = vld [vmem:[#allocation8 + $0x2e8] sm:$0xff]  ;;  %v331_v10 = vld [vmem:[#allocation8 + $0x1b8] sm:$0xff] }
  0x47   :  { %457 = vmatpush.msrb.mxu2 %v325_v16  ;;  %437 = vmatpush.msrb.mxu1 %v388_v17  ;;  %v300_v39 = vld [vmem:[#allocation8 + $0xc0] sm:$0xff]  ;;  %v301_v40 = vld [vmem:[#allocation8 + $0xc8] sm:$0xff]  ;;  %v398_v11 = vld [vmem:[#allocation8 + $0x3d0] sm:$0xff] }
  0x48   :  { %477 = vmatpush.msrb.mxu3 %v389_v18  ;;  %418 = vmatpush.msrb.mxu0 %v320_v19  ;;  %v364_v41 = vld [vmem:[#allocation8 + $0x2c0] sm:$0xff]  ;;  %v365_v42 = vld [vmem:[#allocation8 + $0x2c8] sm:$0xff]  ;;  %v399_v12 = vld [vmem:[#allocation8 + $0x3d8] sm:$0xff] }
  0x49   :  { %458 = vmatpush.msrb.mxu2 %v321_v20  ;;  %438 = vmatpush.msrb.mxu1 %v384_v21  ;;  %v296_v43 = vld [vmem:[#allocation8 + $0xa0] sm:$0xff]  ;;  %v297_v44 = vld [vmem:[#allocation8 + $0xa8] sm:$0xff]  ;;  %v326_v13 = vld [vmem:[#allocation8 + $0x190] sm:$0xff] }
  0x4a   :  { %478 = vmatpush.msrb.mxu3 %v385_v22  ;;  %419 = vmatpush.msrb.mxu0 %v316_v23  ;;  %v360_v45 = vld [vmem:[#allocation8 + $0x2a0] sm:$0xff]  ;;  %v361_v46 = vld [vmem:[#allocation8 + $0x2a8] sm:$0xff]  ;;  %v327_v14 = vld [vmem:[#allocation8 + $0x198] sm:$0xff] }
  0x4b   :  { %459 = vmatpush.msrb.mxu2 %v317_v24  ;;  %439 = vmatpush.msrb.mxu1 %v380_v25  ;;  %v292_v47 = vld [vmem:[#allocation8 + $0x80] sm:$0xff]  ;;  %v293_v48 = vld [vmem:[#allocation8 + $0x88] sm:$0xff]  ;;  %v394_v15 = vld [vmem:[#allocation8 + $0x3b0] sm:$0xff] }
  0x4c   :  { %479 = vmatpush.msrb.mxu3 %v381_v26  ;;  %420 = vmatpush.msrb.mxu0 %v312_v27  ;;  %v356_v49 = vld [vmem:[#allocation8 + $0x280] sm:$0xff]  ;;  %v357_v50 = vld [vmem:[#allocation8 + $0x288] sm:$0xff]  ;;  %v395_v16 = vld [vmem:[#allocation8 + $0x3b8] sm:$0xff] }
  0x4d   :  { %460 = vmatpush.msrb.mxu2 %v313_v28  ;;  %440 = vmatpush.msrb.mxu1 %v376_v29  ;;  %v288_v51 = vld [vmem:[#allocation8 + $0x60] sm:$0xff]  ;;  %v289_v52 = vld [vmem:[#allocation8 + $0x68] sm:$0xff]  ;;  %v322_v17 = vld [vmem:[#allocation8 + $0x170] sm:$0xff] }
  0x4e   :  { %480 = vmatpush.msrb.mxu3 %v377_v30  ;;  %421 = vmatpush.msrb.mxu0 %v308_v31  ;;  %v352_v53 = vld [vmem:[#allocation8 + $0x260] sm:$0xff]  ;;  %v353_v54 = vld [vmem:[#allocation8 + $0x268] sm:$0xff]  ;;  %v323_v18 = vld [vmem:[#allocation8 + $0x178] sm:$0xff] }
  0x4f   :  { %461 = vmatpush.msrb.mxu2 %v309_v32  ;;  %441 = vmatpush.msrb.mxu1 %v372_v33  ;;  %v284_v55 = vld [vmem:[#allocation8 + $0x40] sm:$0xff]  ;;  %v285_v56 = vld [vmem:[#allocation8 + $0x48] sm:$0xff]  ;;  %v390_v19 = vld [vmem:[#allocation8 + $0x390] sm:$0xff] }
  0x50   :  { %481 = vmatpush.msrb.mxu3 %v373_v34  ;;  %422 = vmatpush.msrb.mxu0 %v304_v35  ;;  %v348_v57 = vld [vmem:[#allocation8 + $0x240] sm:$0xff]  ;;  %v349_v58 = vld [vmem:[#allocation8 + $0x248] sm:$0xff]  ;;  %v391_v20 = vld [vmem:[#allocation8 + $0x398] sm:$0xff] }
  0x51   :  { %462 = vmatpush.msrb.mxu2 %v305_v36  ;;  %442 = vmatpush.msrb.mxu1 %v368_v37  ;;  %v280_v59 = vld [vmem:[#allocation8 + $0x20] sm:$0xff]  ;;  %v281_v60 = vld [vmem:[#allocation8 + $0x28] sm:$0xff]  ;;  %v318_v21 = vld [vmem:[#allocation8 + $0x150] sm:$0xff] }
  0x52   :  { %482 = vmatpush.msrb.mxu3 %v369_v38  ;;  %423 = vmatpush.msrb.mxu0 %v300_v39  ;;  %v344_v61 = vld [vmem:[#allocation8 + $0x220] sm:$0xff]  ;;  %v345_v62 = vld [vmem:[#allocation8 + $0x228] sm:$0xff]  ;;  %v319_v22 = vld [vmem:[#allocation8 + $0x158] sm:$0xff] }
  0x53   :  { %463 = vmatpush.msrb.mxu2 %v301_v40  ;;  %443 = vmatpush.msrb.mxu1 %v364_v41  ;;  %v276_v63 = vld [vmem:[#allocation8] sm:$0xff]  ;;  %v277_v0 = vld [vmem:[#allocation8 + $0x8] sm:$0xff]  ;;  %v314_v23 = vld [vmem:[#allocation8 + $0x130] sm:$0xff] }
  0x54   :  { %483 = vmatpush.msrb.mxu3 %v365_v42  ;;  %424 = vmatpush.msrb.mxu0 %v296_v43  ;;  %v340_v3 = vld [vmem:[#allocation8 + $0x200] sm:$0xff]  ;;  %v341_v4 = vld [vmem:[#allocation8 + $0x208] sm:$0xff]  ;;  %v315_v24 = vld [vmem:[#allocation8 + $0x138] sm:$0xff] }
  0x55   :  { %464 = vmatpush.msrb.mxu2 %v297_v44  ;;  %444 = vmatpush.msrb.mxu1 %v360_v45  ;;  %v310_v25 = vld [vmem:[#allocation8 + $0x110] sm:$0xff]  ;;  %v311_v27 = vld [vmem:[#allocation8 + $0x118] sm:$0xff] }
  0x56   :  { %484 = vmatpush.msrb.mxu3 %v361_v46  ;;  %425 = vmatpush.msrb.mxu0 %v292_v47  ;;  %v386_v26 = vld [vmem:[#allocation8 + $0x370] sm:$0xff]  ;;  %v387_v28 = vld [vmem:[#allocation8 + $0x378] sm:$0xff] }
  0x57   :  { %465 = vmatpush.msrb.mxu2 %v293_v48  ;;  %445 = vmatpush.msrb.mxu1 %v356_v49  ;;  %v306_v29 = vld [vmem:[#allocation8 + $0xf0] sm:$0xff]  ;;  %v307_v31 = vld [vmem:[#allocation8 + $0xf8] sm:$0xff] }
  0x58   :  { %485 = vmatpush.msrb.mxu3 %v357_v50  ;;  %426 = vmatpush.msrb.mxu0 %v288_v51  ;;  %v382_v30 = vld [vmem:[#allocation8 + $0x350] sm:$0xff]  ;;  %v383_v32 = vld [vmem:[#allocation8 + $0x358] sm:$0xff] }
  0x59   :  { %466 = vmatpush.msrb.mxu2 %v289_v52  ;;  %446 = vmatpush.msrb.mxu1 %v352_v53  ;;  %v302_v33 = vld [vmem:[#allocation8 + $0xd0] sm:$0xff]  ;;  %v303_v35 = vld [vmem:[#allocation8 + $0xd8] sm:$0xff] }
  0x5a   :  { %486 = vmatpush.msrb.mxu3 %v353_v54  ;;  %427 = vmatpush.msrb.mxu0 %v284_v55  ;;  %v378_v34 = vld [vmem:[#allocation8 + $0x330] sm:$0xff]  ;;  %v379_v36 = vld [vmem:[#allocation8 + $0x338] sm:$0xff] }
  0x5b   :  { %467 = vmatpush.msrb.mxu2 %v285_v56  ;;  %447 = vmatpush.msrb.mxu1 %v348_v57  ;;  %v298_v37 = vld [vmem:[#allocation8 + $0xb0] sm:$0xff]  ;;  %v299_v39 = vld [vmem:[#allocation8 + $0xb8] sm:$0xff] }
  0x5c   :  { %487 = vmatpush.msrb.mxu3 %v349_v58  ;;  %428 = vmatpush.msrb.mxu0 %v280_v59  ;;  %v374_v38 = vld [vmem:[#allocation8 + $0x310] sm:$0xff]  ;;  %v375_v40 = vld [vmem:[#allocation8 + $0x318] sm:$0xff] }
  0x5d   :  { %468 = vmatpush.msrb.mxu2 %v281_v60  ;;  %448 = vmatpush.msrb.mxu1 %v344_v61  ;;  %v294_v41 = vld [vmem:[#allocation8 + $0x90] sm:$0xff]  ;;  %v295_v43 = vld [vmem:[#allocation8 + $0x98] sm:$0xff] }
  0x5e   :  { %488 = vmatpush.msrb.mxu3 %v345_v62  ;;  %429 = vmatpush.msrb.mxu0 %v276_v63  ;;  %v370_v42 = vld [vmem:[#allocation8 + $0x2f0] sm:$0xff]  ;;  %v371_v44 = vld [vmem:[#allocation8 + $0x2f8] sm:$0xff] }
  0x5f   :  { %469 = vmatpush.msrb.mxu2 %v277_v0  ;;  %449 = vmatpush.msrb.mxu1 %v340_v3  ;;  %v290_v45 = vld [vmem:[#allocation8 + $0x70] sm:$0xff]  ;;  %v291_v47 = vld [vmem:[#allocation8 + $0x78] sm:$0xff] }
  0x60   :  { %494 = vmatpush.msra.mxu0 %v338_v1  ;;  %489 = vmatpush.msrb.mxu3 %v341_v4  ;;  %v366_v46 = vld [vmem:[#allocation8 + $0x2d0] sm:$0xff]  ;;  %v367_v48 = vld [vmem:[#allocation8 + $0x2d8] sm:$0xff] }
  0x61   :  { %534 = vmatpush.msra.mxu2 %v339_v2  ;;  %514 = vmatpush.msra.mxu1 %v402_v7  ;;  %v286_v49 = vld [vmem:[#allocation8 + $0x50] sm:$0xff]  ;;  %v287_v51 = vld [vmem:[#allocation8 + $0x58] sm:$0xff] }
  0x62   :  { %495 = vmatpush.msra.mxu0 %v334_v5  ;;  %554 = vmatpush.msra.mxu3 %v403_v8  ;;  %v362_v50 = vld [vmem:[#allocation8 + $0x2b0] sm:$0xff]  ;;  %v363_v52 = vld [vmem:[#allocation8 + $0x2b8] sm:$0xff] }
  0x63   :  { %535 = vmatpush.msra.mxu2 %v335_v6  ;;  %515 = vmatpush.msra.mxu1 %v398_v11  ;;  %v282_v53 = vld [vmem:[#allocation8 + $0x30] sm:$0xff]  ;;  %v283_v55 = vld [vmem:[#allocation8 + $0x38] sm:$0xff] }
  0x64   :  { %496 = vmatpush.msra.mxu0 %v330_v9  ;;  %555 = vmatpush.msra.mxu3 %v399_v12  ;;  %v358_v54 = vld [vmem:[#allocation8 + $0x290] sm:$0xff]  ;;  %v359_v56 = vld [vmem:[#allocation8 + $0x298] sm:$0xff] }
  0x65   :  { %536 = vmatpush.msra.mxu2 %v331_v10  ;;  %516 = vmatpush.msra.mxu1 %v394_v15  ;;  %v278_v57 = vld [vmem:[#allocation8 + $0x10] sm:$0xff]  ;;  %v279_v59 = vld [vmem:[#allocation8 + $0x18] sm:$0xff] }
  0x66   :  { %497 = vmatpush.msra.mxu0 %v326_v13  ;;  %556 = vmatpush.msra.mxu3 %v395_v16  ;;  %v354_v58 = vld [vmem:[#allocation8 + $0x270] sm:$0xff]  ;;  %v355_v60 = vld [vmem:[#allocation8 + $0x278] sm:$0xff] }
  0x67   :  { %537 = vmatpush.msra.mxu2 %v327_v14  ;;  %517 = vmatpush.msra.mxu1 %v390_v19  ;;  %v350_v61 = vld [vmem:[#allocation8 + $0x250] sm:$0xff]  ;;  %v351_v62 = vld [vmem:[#allocation8 + $0x258] sm:$0xff] }
  0x68   :  { %498 = vmatpush.msra.mxu0 %v322_v17  ;;  %557 = vmatpush.msra.mxu3 %v391_v20  ;;  %v346_v63 = vld [vmem:[#allocation8 + $0x230] sm:$0xff]  ;;  %v347_v0 = vld [vmem:[#allocation8 + $0x238] sm:$0xff] }
  0x69   :  { %538 = vmatpush.msra.mxu2 %v323_v18  ;;  %518 = vmatpush.msra.mxu1 %v386_v26  ;;  %v342_v1 = vld [vmem:[#allocation8 + $0x210] sm:$0xff]  ;;  %v343_v2 = vld [vmem:[#allocation8 + $0x218] sm:$0xff] }
  0x6a   :  { %499 = vmatpush.msra.mxu0 %v318_v21  ;;  %558 = vmatpush.msra.mxu3 %v387_v28  ;;  %v180_v3 = vld [vmem:[#allocation7] sm:$0x3]  ;;  %v596_v18 = vld [vmem:[#allocation11 + $0x70] sm:$0xff]  ;;  %v595_v21 = vld [vmem:[#allocation11 + $0x68] sm:$0xff] }
  0x6b   :  { %539 = vmatpush.msra.mxu2 %v319_v22  ;;  %519 = vmatpush.msra.mxu1 %v382_v30  ;;  %v182_v4 = vperm.slane %v180_v3, 0  ;;  %v183_v9 = vperm.slane %v180_v3, 1  ;;  %v597_v14 = vld [vmem:[#allocation11 + $0x78] sm:$0xff]  ;;  %v628_v19 = vld [vmem:[#allocation11 + $0x170] sm:$0xff]  ;;  %v627_v22 = vld [vmem:[#allocation11 + $0x168] sm:$0xff] }
  0x6c   :  { %500 = vmatpush.msra.mxu0 %v314_v23  ;;  %559 = vmatpush.msra.mxu3 %v383_v32  ;;  %v629_v15 = vld [vmem:[#allocation11 + $0x178] sm:$0xff]  ;;  %v626_v28 = vld [vmem:[#allocation11 + $0x160] sm:$0xff]  ;;  %v592_v30 = vld [vmem:[#allocation11 + $0x50] sm:$0xff] }
  0x6d   :  { %540 = vmatpush.msra.mxu2 %v315_v24  ;;  %520 = vmatpush.msra.mxu1 %v378_v34  ;;  %v594_v24 = vld [vmem:[#allocation11 + $0x60] sm:$0xff]  ;;  %v593_v26 = vld [vmem:[#allocation11 + $0x58] sm:$0xff]  ;;  %v591_v34 = vld [vmem:[#allocation11 + $0x48] sm:$0xff] }
  0x6e   :  { %501 = vmatpush.msra.mxu0 %v310_v25  ;;  %560 = vmatpush.msra.mxu3 %v379_v36  ;;  %v613_v25 = vld [vmem:[#allocation11 + $0xf8] sm:$0xff]  ;;  %v590_v36 = vld [vmem:[#allocation11 + $0x40] sm:$0xff] }
  0x6f   :  { %541 = vmatpush.msra.mxu2 %v311_v27  ;;  %521 = vmatpush.msra.mxu1 %v374_v38  ;;  %v612_v27 = vld [vmem:[#allocation11 + $0xf0] sm:$0xff]  ;;  %v625_v32 = vld [vmem:[#allocation11 + $0x158] sm:$0xff] }
  0x70   :  { %502 = vmatpush.msra.mxu0 %v306_v29  ;;  %561 = vmatpush.msra.mxu3 %v375_v40  ;;  %v645_v29 = vld [vmem:[#allocation11 + $0x1f8] sm:$0xff]  ;;  %v588_v40 = vld [vmem:[#allocation11 + $0x30] sm:$0xff] }
  0x71   :  { %542 = vmatpush.msra.mxu2 %v307_v31  ;;  %522 = vmatpush.msra.mxu1 %v370_v42  ;;  %v611_v31 = vld [vmem:[#allocation11 + $0xe8] sm:$0xff]  ;;  %v589_v38 = vld [vmem:[#allocation11 + $0x38] sm:$0xff]  ;;  %v624_v42 = vld [vmem:[#allocation11 + $0x150] sm:$0xff] }
  0x72   :  { %503 = vmatpush.msra.mxu0 %v302_v33  ;;  %562 = vmatpush.msra.mxu3 %v371_v44  ;;  %v644_v33 = vld [vmem:[#allocation11 + $0x1f0] sm:$0xff]  ;;  %v587_v44 = vld [vmem:[#allocation11 + $0x28] sm:$0xff]  ;;  %v637_v3 = vld [vmem:[#allocation11 + $0x1b8] sm:$0xff] }
  0x73   :  { %543 = vmatpush.msra.mxu2 %v303_v35  ;;  %523 = vmatpush.msra.mxu1 %v366_v46  ;;  %v610_v35 = vld [vmem:[#allocation11 + $0xe0] sm:$0xff]  ;;  %v623_v46 = vld [vmem:[#allocation11 + $0x148] sm:$0xff] }
  0x74   :  { %504 = vmatpush.msra.mxu0 %v298_v37  ;;  %563 = vmatpush.msra.mxu3 %v367_v48  ;;  %v609_v37 = vld [vmem:[#allocation11 + $0xd8] sm:$0xff]  ;;  %v586_v48 = vld [vmem:[#allocation11 + $0x20] sm:$0xff] }
  0x75   :  { %544 = vmatpush.msra.mxu2 %v299_v39  ;;  %524 = vmatpush.msra.mxu1 %v362_v50  ;;  %v608_v39 = vld [vmem:[#allocation11 + $0xd0] sm:$0xff]  ;;  %v622_v50 = vld [vmem:[#allocation11 + $0x140] sm:$0xff] }
  0x76   :  { %505 = vmatpush.msra.mxu0 %v294_v41  ;;  %564 = vmatpush.msra.mxu3 %v363_v52  ;;  %v607_v41 = vld [vmem:[#allocation11 + $0xc8] sm:$0xff]  ;;  %v585_v52 = vld [vmem:[#allocation11 + $0x18] sm:$0xff] }
  0x77   :  { %545 = vmatpush.msra.mxu2 %v295_v43  ;;  %525 = vmatpush.msra.mxu1 %v358_v54  ;;  %v643_v43 = vld [vmem:[#allocation11 + $0x1e8] sm:$0xff]  ;;  %v621_v54 = vld [vmem:[#allocation11 + $0x138] sm:$0xff] }
  0x78   :  { %506 = vmatpush.msra.mxu0 %v290_v45  ;;  %565 = vmatpush.msra.mxu3 %v359_v56  ;;  %v606_v45 = vld [vmem:[#allocation11 + $0xc0] sm:$0xff]  ;;  %v584_v56 = vld [vmem:[#allocation11 + $0x10] sm:$0xff] }
  0x79   :  { %546 = vmatpush.msra.mxu2 %v291_v47  ;;  %526 = vmatpush.msra.mxu1 %v354_v58  ;;  %v642_v47 = vld [vmem:[#allocation11 + $0x1e0] sm:$0xff]  ;;  %v620_v58 = vld [vmem:[#allocation11 + $0x130] sm:$0xff] }
  0x7a   :  { %507 = vmatpush.msra.mxu0 %v286_v49  ;;  %566 = vmatpush.msra.mxu3 %v355_v60  ;;  %v605_v49 = vld [vmem:[#allocation11 + $0xb8] sm:$0xff]  ;;  %v583_v60 = vld [vmem:[#allocation11 + $0x8] sm:$0xff] }
  0x7b   :  { %547 = vmatpush.msra.mxu2 %v287_v51  ;;  %527 = vmatpush.msra.mxu1 %v350_v61  ;;  %v641_v51 = vld [vmem:[#allocation11 + $0x1d8] sm:$0xff]  ;;  %v602_v61 = vld [vmem:[#allocation11 + $0xa0] sm:$0xff] }
  0x7c   :  { %508 = vmatpush.msra.mxu0 %v282_v53  ;;  %567 = vmatpush.msra.mxu3 %v351_v62  ;;  %v604_v53 = vld [vmem:[#allocation11 + $0xb0] sm:$0xff]  ;;  %v619_v62 = vld [vmem:[#allocation11 + $0x128] sm:$0xff] }
  0x7d   :  { %548 = vmatpush.msra.mxu2 %v283_v55  ;;  %528 = vmatpush.msra.mxu1 %v346_v63  ;;  %v640_v55 = vld [vmem:[#allocation11 + $0x1d0] sm:$0xff]  ;;  %v638_v63 = vld [vmem:[#allocation11 + $0x1c0] sm:$0xff] }
  0x7e   :  { %509 = vmatpush.msra.mxu0 %v278_v57  ;;  %568 = vmatpush.msra.mxu3 %v347_v0  ;;  %v603_v57 = vld [vmem:[#allocation11 + $0xa8] sm:$0xff]  ;;  %v582_v0 = vld [vmem:[#allocation11] sm:$0xff] }
  0x7f   :  { %549 = vmatpush.msra.mxu2 %v279_v59  ;;  %529 = vmatpush.msra.mxu1 %v342_v1  ;;  %v639_v59 = vld [vmem:[#allocation11 + $0x1c8] sm:$0xff]  ;;  %v601_v1 = vld [vmem:[#allocation11 + $0x98] sm:$0xff] }
  0x80   :  { %569 = vmatpush.msra.mxu3 %v343_v2  ;;  %v618_v2 = vld [vmem:[#allocation11 + $0x120] sm:$0xff] }
  0xba   :  { %v209_v5 = vpop.f32.mrf.mxu0 }
  0xbb   :  { %v210_v6 = vadd.f32 %v209_v5, %v182_v4  ;;  %v600_v4 = vld [vmem:[#allocation11 + $0x90] sm:$0xff]  ;;  %v617_v5 = vld [vmem:[#allocation11 + $0x118] sm:$0xff] }
  0xbc   :  { %v229_v7 = vpop.f32.mrf.mxu1 }
  0xbd   :  { %v230_v8 = vadd.f32 %v229_v7, %v210_v6  ;;  %v636_v6 = vld [vmem:[#allocation11 + $0x1b0] sm:$0xff]  ;;  %v599_v7 = vld [vmem:[#allocation11 + $0x88] sm:$0xff] }
  0xbf   :  { %v272_v10 = vmul.f32 0.2, %v230_v8 }
  0xc1   :  { %v249_v11 = vpop.f32.mrf.mxu2  ;;  %v274_v12 = vmax.f32 %v230_v8, %v272_v10  ;;  %v616_v8 = vld [vmem:[#allocation11 + $0x110] sm:$0xff]  ;;  %v598_v10 = vld [vmem:[#allocation11 + $0x80] sm:$0xff] }
  0xc2   :  { %v250_v13 = vadd.f32 %v249_v11, %v183_v9  ;;  %v635_v9 = vld [vmem:[#allocation11 + $0x1a8] sm:$0xff] }
  0xc3   :  { %v269_v16 = vpop.f32.mrf.mxu3  ;;  %430 = vmatmul.f32.vlgmr.msrb.gmra.mxu0 %v274_v12  ;;  %470 = vmatmul.f32.vlgmr.msrb.gmra.mxu2 %v274_v12  ;;  %v615_v11 = vld [vmem:[#allocation11 + $0x108] sm:$0xff] }
  0xc4   :  { %v270_v17 = vadd.f32 %v269_v16, %v250_v13  ;;  %650 = vmatpush.msrb.mxu0 %v597_v14  ;;  %690 = vmatpush.msrb.mxu2 %v629_v15  ;;  %v614_v13 = vld [vmem:[#allocation11 + $0x100] sm:$0xff]  ;;  %v633_v14 = vld [vmem:[#allocation11 + $0x198] sm:$0xff]  ;;  %v632_v15 = vld [vmem:[#allocation11 + $0x190] sm:$0xff] }
  0xc5   :  { %v631_v16 = vld [vmem:[#allocation11 + $0x188] sm:$0xff] }
  0xc6   :  { %v273_v20 = vmul.f32 0.2, %v270_v17  ;;  %651 = vmatpush.msrb.mxu0 %v596_v18  ;;  %691 = vmatpush.msrb.mxu2 %v628_v19  ;;  %v404_v18 = vld [vmem:[#allocation10] sm:$0xf] }
  0xc8   :  { %v275_v23 = vmax.f32 %v270_v17, %v273_v20  ;;  %652 = vmatpush.msrb.mxu0 %v595_v21  ;;  %692 = vmatpush.msrb.mxu2 %v627_v22  ;;  %v630_v17 = vld [vmem:[#allocation11 + $0x180] sm:$0xff]  ;;  %v406_v20 = vperm.slane %v404_v18, 0 }
  0xca   :  { %450 = vmatmul.f32.vlgmr.msrb.gmra.mxu1 %v275_v23  ;;  %490 = vmatmul.f32.vlgmr.msrb.gmra.mxu3 %v275_v23 }
  0xcb   :  { %653 = vmatpush.msrb.mxu0 %v594_v24  ;;  %670 = vmatpush.msrb.mxu1 %v613_v25  ;;  %v407_v25 = vperm.slane %v404_v18, 1 }
  0xcc   :  { %510 = vmatmul.f32.vlgmr.msra.gmra.mxu0 %v274_v12  ;;  %550 = vmatmul.f32.vlgmr.msra.gmra.mxu2 %v274_v12  ;;  %v634_v12 = vld [vmem:[#allocation11 + $0x1a0] sm:$0xff] }
  0xcd   :  { %654 = vmatpush.msrb.mxu0 %v593_v26  ;;  %671 = vmatpush.msrb.mxu1 %v612_v27  ;;  %v408_v27 = vperm.slane %v404_v18, 2 }
  0xce   :  { %693 = vmatpush.msrb.mxu2 %v626_v28  ;;  %710 = vmatpush.msrb.mxu3 %v645_v29 }
  0xcf   :  { %655 = vmatpush.msrb.mxu0 %v592_v30  ;;  %672 = vmatpush.msrb.mxu1 %v611_v31 }
  0xd0   :  { %694 = vmatpush.msrb.mxu2 %v625_v32  ;;  %711 = vmatpush.msrb.mxu3 %v644_v33 }
  0xd1   :  { %656 = vmatpush.msrb.mxu0 %v591_v34  ;;  %673 = vmatpush.msrb.mxu1 %v610_v35 }
  0xd2   :  { %530 = vmatmul.f32.vlgmr.msra.gmra.mxu1 %v275_v23  ;;  %570 = vmatmul.f32.vlgmr.msra.gmra.mxu3 %v275_v23 }
  0xd3   :  { %657 = vmatpush.msrb.mxu0 %v590_v36  ;;  %674 = vmatpush.msrb.mxu1 %v609_v37  ;;  %v409_v37 = vperm.slane %v404_v18, 3 }
  0xd4   :  { %695 = vmatpush.msrb.mxu2 %v624_v42  ;;  %712 = vmatpush.msrb.mxu3 %v643_v43 }
  0xd5   :  { %658 = vmatpush.msrb.mxu0 %v589_v38  ;;  %675 = vmatpush.msrb.mxu1 %v608_v39 }
  0xd6   :  { %696 = vmatpush.msrb.mxu2 %v623_v46  ;;  %713 = vmatpush.msrb.mxu3 %v642_v47  ;;  %v765_v47 = vld [vmem:[%s1029_s6] ss:$0 sm:$0xff] }
  0xd7   :  { %659 = vmatpush.msrb.mxu0 %v588_v40  ;;  %676 = vmatpush.msrb.mxu1 %v607_v41 }
  0xd8   :  { %697 = vmatpush.msrb.mxu2 %v622_v50  ;;  %714 = vmatpush.msrb.mxu3 %v641_v51 }
  0xd9   :  { %660 = vmatpush.msrb.mxu0 %v587_v44  ;;  %677 = vmatpush.msrb.mxu1 %v606_v45 }
  0xda   :  { %698 = vmatpush.msrb.mxu2 %v621_v54  ;;  %715 = vmatpush.msrb.mxu3 %v640_v55 }
  0xdb   :  { %661 = vmatpush.msrb.mxu0 %v586_v48  ;;  %678 = vmatpush.msrb.mxu1 %v605_v49 }
  0xdc   :  { %699 = vmatpush.msrb.mxu2 %v620_v58  ;;  %716 = vmatpush.msrb.mxu3 %v639_v59 }
  0xdd   :  { %662 = vmatpush.msrb.mxu0 %v585_v52  ;;  %679 = vmatpush.msrb.mxu1 %v604_v53 }
  0xde   :  { %700 = vmatpush.msrb.mxu2 %v619_v62  ;;  %717 = vmatpush.msrb.mxu3 %v638_v63 }
  0xdf   :  { %663 = vmatpush.msrb.mxu0 %v584_v56  ;;  %680 = vmatpush.msrb.mxu1 %v603_v57 }
  0xe0   :  { %701 = vmatpush.msrb.mxu2 %v618_v2  ;;  %718 = vmatpush.msrb.mxu3 %v637_v3 }
  0xe1   :  { %664 = vmatpush.msrb.mxu0 %v583_v60  ;;  %681 = vmatpush.msrb.mxu1 %v602_v61 }
  0xe2   :  { %702 = vmatpush.msrb.mxu2 %v617_v5  ;;  %719 = vmatpush.msrb.mxu3 %v636_v6 }
  0xe3   :  { %665 = vmatpush.msrb.mxu0 %v582_v0  ;;  %682 = vmatpush.msrb.mxu1 %v601_v1 }
  0xe4   :  { %703 = vmatpush.msrb.mxu2 %v616_v8  ;;  %720 = vmatpush.msrb.mxu3 %v635_v9 }
  0xe5   :  { %683 = vmatpush.msrb.mxu1 %v600_v4 }
  0xe6   :  { %704 = vmatpush.msrb.mxu2 %v615_v11  ;;  %721 = vmatpush.msrb.mxu3 %v634_v12 }
  0xe7   :  { %684 = vmatpush.msrb.mxu1 %v599_v7 }
  0xe8   :  { %705 = vmatpush.msrb.mxu2 %v614_v13  ;;  %722 = vmatpush.msrb.mxu3 %v633_v14 }
  0xe9   :  { %685 = vmatpush.msrb.mxu1 %v598_v10 }
  0xea   :  { %723 = vmatpush.msrb.mxu3 %v632_v15 }
  0xec   :  { %724 = vmatpush.msrb.mxu3 %v631_v16 }
  0xee   :  { %725 = vmatpush.msrb.mxu3 %v630_v17 }
 0x140   :  { %v431_v19 = vpop.f32.mrf.mxu0 }
 0x141   :  { %v432_v21 = vadd.f32 %v431_v19, %v406_v20 }
 0x146   :  { %v471_v23 = vpop.f32.mrf.mxu2 }
 0x147   :  { %v451_v22 = vpop.f32.mrf.mxu1  ;;  %v472_v30 = vadd.f32 %v471_v23, %v407_v25 }
 0x148   :  { %v452_v24 = vadd.f32 %v451_v22, %v432_v21 }
 0x149   :  { %v511_v28 = vpop.f32.mrf.mxu0 }
 0x14a   :  { %v574_v26 = vmul.f32 0.2, %v452_v24  ;;  %v512_v32 = vadd.f32 %v511_v28, %v408_v27 }
 0x14c   :  { %v578_v29 = vmax.f32 %v452_v24, %v574_v26 }
 0x14d   :  { %v491_v31 = vpop.f32.mrf.mxu3 }
 0x14e   :  { %v492_v33 = vadd.f32 %v491_v31, %v472_v30  ;;  %666 = vmatmul.f32.vlgmr.msrb.gmra.mxu0 %v578_v29 }
 0x14f   :  { %v531_v34 = vpop.f32.mrf.mxu1  ;;  %v551_v38 = vpop.f32.mrf.mxu2 }
 0x150   :  { %v575_v35 = vmul.f32 0.2, %v492_v33  ;;  %v532_v36 = vadd.f32 %v531_v34, %v512_v32  ;;  %v552_v42 = vadd.f32 %v551_v38, %v409_v37 }
 0x152   :  { %v579_v39 = vmax.f32 %v492_v33, %v575_v35  ;;  %v576_v40 = vmul.f32 0.2, %v532_v36 }
 0x154   :  { %v580_v41 = vmax.f32 %v532_v36, %v576_v40  ;;  %686 = vmatmul.f32.vlgmr.msrb.gmra.mxu1 %v579_v39 }
 0x155   :  { %v571_v43 = vpop.f32.mrf.mxu3 }
 0x156   :  { %v572_v44 = vadd.f32 %v571_v43, %v552_v42  ;;  %706 = vmatmul.f32.vlgmr.msrb.gmra.mxu2 %v580_v41 }
 0x158   :  { %v577_v45 = vmul.f32 0.2, %v572_v44 }
 0x15a   :  { %v581_v46 = vmax.f32 %v572_v44, %v577_v45 }
 0x15c   :  { %726 = vmatmul.f32.vlgmr.msrb.gmra.mxu3 %v581_v46 }
 0x1cb   :  { %v667_v48 = vpop.f32.mrf.mxu0 }
 0x1cc   :  { %v668_v50 = vadd.f32 %v765_v47, %v667_v48 }
 0x1d1   :  { %v687_v49 = vpop.f32.mrf.mxu1 }
 0x1d2   :  { %v688_v52 = vadd.f32 %v687_v49, %v668_v50 }
 0x1d9   :  { %v707_v51 = vpop.f32.mrf.mxu2 }
 0x1da   :  { %v708_v53 = vadd.f32 %v707_v51, %v688_v52 }
 0x1df   :  { %v727_v54 = vpop.f32.mrf.mxu3 }
 0x1e0   :  { %v728_v55 = vadd.f32 %v727_v54, %v708_v53 }
 0x1e2   :  { %766 = vtanh.f32 %v728_v55 }
 0x1e8   :  { %v767_v56 = vpop.eup %766 }
 0x1e9   :  { %731 = vst [vmem:[#allocation13] sm:$0x3] %v767_v56 }
 0x1ea   :  { %742 = dma.vmem_to_hbm [thread:$0]  %s738_s11, 32, %s740_s14, [#allocation4]  }
 0x1eb   :  { %944 = dma.done.wait [#allocation4], 32  }
 0x1ec   :  { %945 = vsyncadd [#allocation4], 4294967264 }
 0x1ed   :  { %747 = vsyncpa [#allocation3], 1 }
 0x1ee   :  { %748 = vsyncpa [#allocation6], 1 }
 0x1ef   :  { %749 = vsyncpa [#allocation9], 1 }
 0x1f0   :  { %750 = vsyncpa [#allocation12], 1 }
 0x1f1   :  { %751 = vsyncpa [#allocation4], 1 }

// kernel: tpu_custom_call.1
= control target key start
LH: loop header
LB: loop body
LE: loop exit
PB: predicated region body
PF: predicated region fallthrough
CT: control target
= control target key end

     0   :  { %12 = vsyncpa [#allocation3], 0  ;;  %s1023_s0 = inlined_call_operand.hbm [shape: f32[2,256], index: 0, kind: input, shape index: {}]   ;;  %s1024_s1 = inlined_call_operand.hbm [shape: f32[256,256], index: 1, kind: input, shape index: {}]   ;;  %s1025_s2 = inlined_call_operand.hbm [shape: f32[1,256], index: 2, kind: input, shape index: {}]   ;;  %s1026_s3 = inlined_call_operand.hbm [shape: f32[256,512], index: 3, kind: input, shape index: {}]   ;;  %s1027_s4 = inlined_call_operand.hbm [shape: f32[1,512], index: 4, kind: input, shape index: {}]   ;;  %s1028_s5 = inlined_call_operand.hbm [shape: f32[512,128], index: 5, kind: input, shape index: {}]   ;;  %s1029_s6 = inlined_call_operand.vmem [shape: f32[1,128], index: 6, kind: input, shape index: {}]   ;;  %s1030_s7 = inlined_call_operand.hbm [shape: f32[2,128], index: 7, kind: output, shape index: {}]  }
   0x1   :  { %13 = vsyncpa [#allocation6], 0 }
   0x2   :  { %14 = vsyncpa [#allocation9], 0 }
   0x3   :  { %15 = vsyncpa [#allocation12], 0  ;;  %s32_s26 = sshll.u32 %s1024_s1, 4  ;;  %s33_s26 = int_to_ptr.hbm [resolvable:$true] %s32_s26 }
   0x4   :  { %16 = vsyncpa [#allocation4], 0  ;;  %s946_s27 = smov [#allocation5]   ;;  %s56_s8 = sshll.u32 %s1026_s3, 4  ;;  %s57_s8 = int_to_ptr.hbm [resolvable:$true] %s56_s8 }
   0x5   :  { %s34_s28 = sshll.u32 %s946_s27, 4  ;;  %s947_s9 = smov 256   ;;  %s35_s28 = int_to_ptr.vmem [resolvable:$true] %s34_s28 }
   0x6   :  { %s948_s10 = smov 16   ;;  %s949_s11 = smov [#allocation8]  }
   0x7   :  { %40 = dma.hbm_to_vmem [thread:$0]  %s33_s26, 8192, %s35_s28, [#allocation6], %s947_s9, %s947_s9, %s948_s10  }
   0x8   :  { %s58_s12 = sshll.u32 %s949_s11, 4  ;;  %s950_s13 = smov 512   ;;  %s59_s12 = int_to_ptr.vmem [resolvable:$true] %s58_s12 }
   0x9   :  { %s951_s14 = smov 32   ;;  %s22_s16 = sshll.u32 %s1023_s0, 4  ;;  %s23_s16 = int_to_ptr.hbm [resolvable:$true] %s22_s16 }
   0xa   :  { %64 = dma.hbm_to_vmem [thread:$0]  %s57_s8, 16384, %s59_s12, [#allocation9], %s950_s13, %s950_s13, %s951_s14  }
   0xb   :  { %s952_s17 = smov [#allocation2]   ;;  %s46_s20 = sshll.u32 %s1025_s2, 4  ;;  %s47_s20 = int_to_ptr.hbm [resolvable:$true] %s46_s20 }
   0xc   :  { %s24_s18 = sshll.u32 %s952_s17, 4  ;;  %s953_s21 = smov [#allocation7]   ;;  %s25_s18 = int_to_ptr.vmem [resolvable:$true] %s24_s18 }
   0xd   :  { %27 = dma.hbm_to_vmem [thread:$0]  %s23_s16, 64, %s25_s18, [#allocation3]  }
   0xe   :  { %s48_s22 = sshll.u32 %s953_s21, 4  ;;  %s70_s25 = sshll.u32 %s1027_s4, 4  ;;  %s49_s22 = int_to_ptr.vmem [resolvable:$true] %s48_s22  ;;  %s71_s25 = int_to_ptr.hbm [resolvable:$true] %s70_s25 }
   0xf   :  { %51 = dma.hbm_to_vmem [thread:$0]  %s47_s20, 32, %s49_s22, [#allocation6]  }
  0x10   :  { %s80_s27 = sshll.u32 %s1028_s5, 4  ;;  %s954_s28 = smov [#allocation10]   ;;  %s81_s27 = int_to_ptr.hbm [resolvable:$true] %s80_s27 }
  0x11   :  { %s72_s29 = sshll.u32 %s954_s28, 4  ;;  %s955_s2 = smov [#allocation11]   ;;  %s73_s29 = int_to_ptr.vmem [resolvable:$true] %s72_s29 }
  0x12   :  { %75 = dma.hbm_to_vmem [thread:$0]  %s71_s25, 64, %s73_s29, [#allocation9]  }
  0x13   :  { %s82_s30 = sshll.u32 %s955_s2, 4  ;;  %s956_s8 = smov 128   ;;  %s83_s30 = int_to_ptr.vmem [resolvable:$true] %s82_s30 }
  0x14   :  { %s957_s9 = smov 8  }
  0x15   :  { %88 = dma.hbm_to_vmem [thread:$0]  %s81_s27, 8192, %s83_s30, [#allocation12], %s956_s8, %s956_s8, %s957_s9  }
  0x16   :  { %936 = dma.done.wait [#allocation3], 64  }
  0x17   :  { %937 = vsyncadd [#allocation3], 4294967232 }
  0x18   :  { %938 = dma.done.wait [#allocation6], 8224  }
  0x19   :  { %939 = vsyncadd [#allocation6], 4294959072 }
  0x1a   :  { %940 = dma.done.wait [#allocation9], 16448  }
  0x1b   :  { %941 = vsyncadd [#allocation9], 4294950848 }
  0x1c   :  { %942 = dma.done.wait [#allocation12], 8192  }
  0x1d   :  { %943 = vsyncadd [#allocation12], 4294959104  ;;  %v146_v0 = vld [vmem:[#allocation5 + $0xf0] sm:$0xff]  ;;  %v147_v1 = vld [vmem:[#allocation5 + $0xf8] sm:$0xff]  ;;  %s958_s10 = smov [#allocation13]   ;;  %s739_s14 = sshll.u32 %s1030_s7, 4  ;;  %s740_s14 = int_to_ptr.hbm [resolvable:$true] %s739_s14 }
  0x1e   :  { %v144_v2 = vld [vmem:[#allocation5 + $0xe0] sm:$0xff]  ;;  %192 = vmatpush.msra.mxu0 %v146_v0  ;;  %232 = vmatpush.msra.mxu2 %v147_v1  ;;  %v178_v3 = vld [vmem:[#allocation5 + $0x1f0] sm:$0xff]  ;;  %v145_v4 = vld [vmem:[#allocation5 + $0xe8] sm:$0xff]  ;;  %s737_s11 = sshll.u32 %s958_s10, 4  ;;  %s738_s11 = int_to_ptr.vmem [resolvable:$true] %s737_s11 }
  0x1f   :  { %v179_v5 = vld [vmem:[#allocation5 + $0x1f8] sm:$0xff]  ;;  %212 = vmatpush.msra.mxu1 %v178_v3  ;;  %v142_v6 = vld [vmem:[#allocation5 + $0xd0] sm:$0xff]  ;;  %v176_v7 = vld [vmem:[#allocation5 + $0x1e0] sm:$0xff] }
  0x20   :  { %252 = vmatpush.msra.mxu3 %v179_v5  ;;  %v143_v8 = vld [vmem:[#allocation5 + $0xd8] sm:$0xff]  ;;  %193 = vmatpush.msra.mxu0 %v144_v2  ;;  %v177_v9 = vld [vmem:[#allocation5 + $0x1e8] sm:$0xff]  ;;  %v174_v10 = vld [vmem:[#allocation5 + $0x1d0] sm:$0xff] }
  0x21   :  { %233 = vmatpush.msra.mxu2 %v145_v4  ;;  %213 = vmatpush.msra.mxu1 %v176_v7  ;;  %v140_v11 = vld [vmem:[#allocation5 + $0xc0] sm:$0xff]  ;;  %v141_v12 = vld [vmem:[#allocation5 + $0xc8] sm:$0xff]  ;;  %v175_v13 = vld [vmem:[#allocation5 + $0x1d8] sm:$0xff] }
  0x22   :  { %253 = vmatpush.msra.mxu3 %v177_v9  ;;  %194 = vmatpush.msra.mxu0 %v142_v6  ;;  %v172_v14 = vld [vmem:[#allocation5 + $0x1c0] sm:$0xff]  ;;  %v173_v15 = vld [vmem:[#allocation5 + $0x1c8] sm:$0xff]  ;;  %v138_v16 = vld [vmem:[#allocation5 + $0xb0] sm:$0xff] }
  0x23   :  { %234 = vmatpush.msra.mxu2 %v143_v8  ;;  %214 = vmatpush.msra.mxu1 %v174_v10  ;;  %v139_v17 = vld [vmem:[#allocation5 + $0xb8] sm:$0xff]  ;;  %v170_v18 = vld [vmem:[#allocation5 + $0x1b0] sm:$0xff]  ;;  %v136_v20 = vld [vmem:[#allocation5 + $0xa0] sm:$0xff] }
  0x24   :  { %254 = vmatpush.msra.mxu3 %v175_v13  ;;  %195 = vmatpush.msra.mxu0 %v140_v11  ;;  %v171_v19 = vld [vmem:[#allocation5 + $0x1b8] sm:$0xff]  ;;  %v137_v21 = vld [vmem:[#allocation5 + $0xa8] sm:$0xff]  ;;  %v168_v22 = vld [vmem:[#allocation5 + $0x1a0] sm:$0xff] }
  0x25   :  { %235 = vmatpush.msra.mxu2 %v141_v12  ;;  %215 = vmatpush.msra.mxu1 %v172_v14  ;;  %v169_v23 = vld [vmem:[#allocation5 + $0x1a8] sm:$0xff]  ;;  %v134_v24 = vld [vmem:[#allocation5 + $0x90] sm:$0xff]  ;;  %v135_v25 = vld [vmem:[#allocation5 + $0x98] sm:$0xff] }
  0x26   :  { %255 = vmatpush.msra.mxu3 %v173_v15  ;;  %196 = vmatpush.msra.mxu0 %v138_v16  ;;  %v166_v26 = vld [vmem:[#allocation5 + $0x190] sm:$0xff]  ;;  %v167_v27 = vld [vmem:[#allocation5 + $0x198] sm:$0xff]  ;;  %v132_v28 = vld [vmem:[#allocation5 + $0x80] sm:$0xff] }
  0x27   :  { %236 = vmatpush.msra.mxu2 %v139_v17  ;;  %216 = vmatpush.msra.mxu1 %v170_v18  ;;  %v133_v29 = vld [vmem:[#allocation5 + $0x88] sm:$0xff]  ;;  %v164_v30 = vld [vmem:[#allocation5 + $0x180] sm:$0xff]  ;;  %v130_v32 = vld [vmem:[#allocation5 + $0x70] sm:$0xff] }
  0x28   :  { %256 = vmatpush.msra.mxu3 %v171_v19  ;;  %197 = vmatpush.msra.mxu0 %v136_v20  ;;  %v165_v31 = vld [vmem:[#allocation5 + $0x188] sm:$0xff]  ;;  %v131_v33 = vld [vmem:[#allocation5 + $0x78] sm:$0xff]  ;;  %v162_v34 = vld [vmem:[#allocation5 + $0x170] sm:$0xff] }
  0x29   :  { %237 = vmatpush.msra.mxu2 %v137_v21  ;;  %217 = vmatpush.msra.mxu1 %v168_v22  ;;  %v163_v35 = vld [vmem:[#allocation5 + $0x178] sm:$0xff]  ;;  %v128_v36 = vld [vmem:[#allocation5 + $0x60] sm:$0xff]  ;;  %v129_v37 = vld [vmem:[#allocation5 + $0x68] sm:$0xff] }
  0x2a   :  { %257 = vmatpush.msra.mxu3 %v169_v23  ;;  %198 = vmatpush.msra.mxu0 %v134_v24  ;;  %v160_v38 = vld [vmem:[#allocation5 + $0x160] sm:$0xff]  ;;  %v161_v39 = vld [vmem:[#allocation5 + $0x168] sm:$0xff]  ;;  %v126_v40 = vld [vmem:[#allocation5 + $0x50] sm:$0xff] }
  0x2b   :  { %238 = vmatpush.msra.mxu2 %v135_v25  ;;  %218 = vmatpush.msra.mxu1 %v166_v26  ;;  %v127_v41 = vld [vmem:[#allocation5 + $0x58] sm:$0xff]  ;;  %v158_v42 = vld [vmem:[#allocation5 + $0x150] sm:$0xff]  ;;  %v124_v44 = vld [vmem:[#allocation5 + $0x40] sm:$0xff] }
  0x2c   :  { %258 = vmatpush.msra.mxu3 %v167_v27  ;;  %199 = vmatpush.msra.mxu0 %v132_v28  ;;  %v159_v43 = vld [vmem:[#allocation5 + $0x158] sm:$0xff]  ;;  %v125_v45 = vld [vmem:[#allocation5 + $0x48] sm:$0xff]  ;;  %v156_v47 = vld [vmem:[#allocation5 + $0x140] sm:$0xff] }
  0x2d   :  { %239 = vmatpush.msra.mxu2 %v133_v29  ;;  %219 = vmatpush.msra.mxu1 %v164_v30  ;;  %v115_v46 = vld [vmem:[#allocation2] sm:$0xf]  ;;  %v157_v48 = vld [vmem:[#allocation5 + $0x148] sm:$0xff]  ;;  %v122_v49 = vld [vmem:[#allocation5 + $0x30] sm:$0xff] }
  0x2e   :  { %259 = vmatpush.msra.mxu3 %v165_v31  ;;  %200 = vmatpush.msra.mxu0 %v130_v32  ;;  %187 = vst [vmem:[#allocation1] ss:$4 sm:$0xff] %v115_v46  ;;  %v123_v50 = vld [vmem:[#allocation5 + $0x38] sm:$0xff]  ;;  %v154_v51 = vld [vmem:[#allocation5 + $0x130] sm:$0xff]  ;;  %v120_v53 = vld [vmem:[#allocation5 + $0x20] sm:$0xff] }
  0x2f   :  { %240 = vmatpush.msra.mxu2 %v131_v33  ;;  %220 = vmatpush.msra.mxu1 %v162_v34  ;;  %v155_v52 = vld [vmem:[#allocation5 + $0x138] sm:$0xff]  ;;  %v121_v54 = vld [vmem:[#allocation5 + $0x28] sm:$0xff]  ;;  %v152_v55 = vld [vmem:[#allocation5 + $0x120] sm:$0xff] }
  0x30   :  { %260 = vmatpush.msra.mxu3 %v163_v35  ;;  %201 = vmatpush.msra.mxu0 %v128_v36  ;;  %v153_v56 = vld [vmem:[#allocation5 + $0x128] sm:$0xff]  ;;  %v118_v57 = vld [vmem:[#allocation5 + $0x10] sm:$0xff]  ;;  %v119_v58 = vld [vmem:[#allocation5 + $0x18] sm:$0xff] }
  0x31   :  { %241 = vmatpush.msra.mxu2 %v129_v37  ;;  %221 = vmatpush.msra.mxu1 %v160_v38  ;;  %v150_v59 = vld [vmem:[#allocation5 + $0x110] sm:$0xff]  ;;  %v151_v60 = vld [vmem:[#allocation5 + $0x118] sm:$0xff]  ;;  %v116_v61 = vld [vmem:[#allocation5] sm:$0xff] }
  0x32   :  { %261 = vmatpush.msra.mxu3 %v161_v39  ;;  %202 = vmatpush.msra.mxu0 %v126_v40  ;;  %v117_v62 = vld [vmem:[#allocation5 + $0x8] sm:$0xff]  ;;  %v148_v0 = vld [vmem:[#allocation5 + $0x100] sm:$0xff] }
  0x33   :  { %242 = vmatpush.msra.mxu2 %v127_v41  ;;  %222 = vmatpush.msra.mxu1 %v158_v42  ;;  %v149_v1 = vld [vmem:[#allocation5 + $0x108] sm:$0xff] }
  0x34   :  { %262 = vmatpush.msra.mxu3 %v159_v43  ;;  %203 = vmatpush.msra.mxu0 %v124_v44  ;;  %v336_v3 = vld [vmem:[#allocation8 + $0x1e0] sm:$0xff]  ;;  %v337_v4 = vld [vmem:[#allocation8 + $0x1e8] sm:$0xff] }
  0x35   :  { %243 = vmatpush.msra.mxu2 %v125_v45  ;;  %223 = vmatpush.msra.mxu1 %v156_v47  ;;  %v188_v63 = vld.sshfl [vmem:[#allocation1] sm:$0xff pattern:$0x73625140]  ;;  %v189_v2 = vld.sshfl [vmem:[#allocation1 + $0x8] sm:$0xff pattern:$0x73625140] }
  0x36   :  { %263 = vmatpush.msra.mxu3 %v157_v48  ;;  %204 = vmatpush.msra.mxu0 %v122_v49  ;;  %v400_v5 = vld [vmem:[#allocation8 + $0x3e0] sm:$0xff]  ;;  %v401_v6 = vld [vmem:[#allocation8 + $0x3e8] sm:$0xff] }
  0x37   :  { %244 = vmatpush.msra.mxu2 %v123_v50  ;;  %224 = vmatpush.msra.mxu1 %v154_v51  ;;  %v332_v7 = vld [vmem:[#allocation8 + $0x1c0] sm:$0xff]  ;;  %v333_v8 = vld [vmem:[#allocation8 + $0x1c8] sm:$0xff] }
  0x38   :  { %264 = vmatpush.msra.mxu3 %v155_v52  ;;  %205 = vmatpush.msra.mxu0 %v120_v53  ;;  %v396_v9 = vld [vmem:[#allocation8 + $0x3c0] sm:$0xff]  ;;  %v397_v10 = vld [vmem:[#allocation8 + $0x3c8] sm:$0xff] }
  0x39   :  { %245 = vmatpush.msra.mxu2 %v121_v54  ;;  %225 = vmatpush.msra.mxu1 %v152_v55  ;;  %v328_v11 = vld [vmem:[#allocation8 + $0x1a0] sm:$0xff]  ;;  %v329_v12 = vld [vmem:[#allocation8 + $0x1a8] sm:$0xff] }
  0x3a   :  { %265 = vmatpush.msra.mxu3 %v153_v56  ;;  %206 = vmatpush.msra.mxu0 %v118_v57  ;;  %v392_v13 = vld [vmem:[#allocation8 + $0x3a0] sm:$0xff]  ;;  %v393_v14 = vld [vmem:[#allocation8 + $0x3a8] sm:$0xff] }
  0x3b   :  { %246 = vmatpush.msra.mxu2 %v119_v58  ;;  %226 = vmatpush.msra.mxu1 %v150_v59  ;;  %v324_v15 = vld [vmem:[#allocation8 + $0x180] sm:$0xff]  ;;  %v325_v16 = vld [vmem:[#allocation8 + $0x188] sm:$0xff] }
  0x3c   :  { %266 = vmatpush.msra.mxu3 %v151_v60  ;;  %207 = vmatpush.msra.mxu0 %v116_v61  ;;  %v388_v17 = vld [vmem:[#allocation8 + $0x380] sm:$0xff]  ;;  %v389_v18 = vld [vmem:[#allocation8 + $0x388] sm:$0xff] }
  0x3d   :  { %247 = vmatpush.msra.mxu2 %v117_v62  ;;  %208 = vmatmul.f32.vlgmr.msra.gmra.mxu0 %v188_v63  ;;  %v320_v19 = vld [vmem:[#allocation8 + $0x160] sm:$0xff]  ;;  %v321_v20 = vld [vmem:[#allocation8 + $0x168] sm:$0xff] }
  0x3e   :  { %248 = vmatmul.f32.vlgmr.msra.gmra.mxu2 %v188_v63  ;;  %227 = vmatpush.msra.mxu1 %v148_v0  ;;  %v384_v21 = vld [vmem:[#allocation8 + $0x360] sm:$0xff]  ;;  %v385_v22 = vld [vmem:[#allocation8 + $0x368] sm:$0xff] }
  0x3f   :  { %267 = vmatpush.msra.mxu3 %v149_v1  ;;  %228 = vmatmul.f32.vlgmr.msra.gmra.mxu1 %v189_v2  ;;  %v316_v23 = vld [vmem:[#allocation8 + $0x140] sm:$0xff]  ;;  %v317_v24 = vld [vmem:[#allocation8 + $0x148] sm:$0xff]  ;;  %v338_v1 = vld [vmem:[#allocation8 + $0x1f0] sm:$0xff] }
  0x40   :  { %268 = vmatmul.f32.vlgmr.msra.gmra.mxu3 %v189_v2  ;;  %414 = vmatpush.msrb.mxu0 %v336_v3  ;;  %v380_v25 = vld [vmem:[#allocation8 + $0x340] sm:$0xff]  ;;  %v381_v26 = vld [vmem:[#allocation8 + $0x348] sm:$0xff]  ;;  %v339_v2 = vld [vmem:[#allocation8 + $0x1f8] sm:$0xff] }
  0x41   :  { %454 = vmatpush.msrb.mxu2 %v337_v4  ;;  %434 = vmatpush.msrb.mxu1 %v400_v5  ;;  %v312_v27 = vld [vmem:[#allocation8 + $0x120] sm:$0xff]  ;;  %v313_v28 = vld [vmem:[#allocation8 + $0x128] sm:$0xff]  ;;  %v334_v5 = vld [vmem:[#allocation8 + $0x1d0] sm:$0xff] }
  0x42   :  { %474 = vmatpush.msrb.mxu3 %v401_v6  ;;  %415 = vmatpush.msrb.mxu0 %v332_v7  ;;  %v376_v29 = vld [vmem:[#allocation8 + $0x320] sm:$0xff]  ;;  %v377_v30 = vld [vmem:[#allocation8 + $0x328] sm:$0xff]  ;;  %v335_v6 = vld [vmem:[#allocation8 + $0x1d8] sm:$0xff] }
  0x43   :  { %455 = vmatpush.msrb.mxu2 %v333_v8  ;;  %435 = vmatpush.msrb.mxu1 %v396_v9  ;;  %v308_v31 = vld [vmem:[#allocation8 + $0x100] sm:$0xff]  ;;  %v309_v32 = vld [vmem:[#allocation8 + $0x108] sm:$0xff]  ;;  %v402_v7 = vld [vmem:[#allocation8 + $0x3f0] sm:$0xff] }
  0x44   :  { %475 = vmatpush.msrb.mxu3 %v397_v10  ;;  %416 = vmatpush.msrb.mxu0 %v328_v11  ;;  %v372_v33 = vld [vmem:[#allocation8 + $0x300] sm:$0xff]  ;;  %v373_v34 = vld [vmem:[#allocation8 + $0x308] sm:$0xff]  ;;  %v403_v8 = vld [vmem:[#allocation8 + $0x3f8] sm:$0xff] }
  0x45   :  { %456 = vmatpush.msrb.mxu2 %v329_v12  ;;  %436 = vmatpush.msrb.mxu1 %v392_v13  ;;  %v304_v35 = vld [vmem:[#allocation8 + $0xe0] sm:$0xff]  ;;  %v305_v36 = vld [vmem:[#allocation8 + $0xe8] sm:$0xff]  ;;  %v330_v9 = vld [vmem:[#allocation8 + $0x1b0] sm:$0xff] }
  0x46   :  { %476 = vmatpush.msrb.mxu3 %v393_v14  ;;  %417 = vmatpush.msrb.mxu0 %v324_v15  ;;  %v368_v37 = vld [vmem:[#allocation8 + $0x2e0] sm:$0xff]  ;;  %v369_v38 = vld [vmem:[#allocation8 + $0x2e8] sm:$0xff]  ;;  %v331_v10 = vld [vmem:[#allocation8 + $0x1b8] sm:$0xff] }
  0x47   :  { %457 = vmatpush.msrb.mxu2 %v325_v16  ;;  %437 = vmatpush.msrb.mxu1 %v388_v17  ;;  %v300_v39 = vld [vmem:[#allocation8 + $0xc0] sm:$0xff]  ;;  %v301_v40 = vld [vmem:[#allocation8 + $0xc8] sm:$0xff]  ;;  %v398_v11 = vld [vmem:[#allocation8 + $0x3d0] sm:$0xff] }
  0x48   :  { %477 = vmatpush.msrb.mxu3 %v389_v18  ;;  %418 = vmatpush.msrb.mxu0 %v320_v19  ;;  %v364_v41 = vld [vmem:[#allocation8 + $0x2c0] sm:$0xff]  ;;  %v365_v42 = vld [vmem:[#allocation8 + $0x2c8] sm:$0xff]  ;;  %v399_v12 = vld [vmem:[#allocation8 + $0x3d8] sm:$0xff] }
  0x49   :  { %458 = vmatpush.msrb.mxu2 %v321_v20  ;;  %438 = vmatpush.msrb.mxu1 %v384_v21  ;;  %v296_v43 = vld [vmem:[#allocation8 + $0xa0] sm:$0xff]  ;;  %v297_v44 = vld [vmem:[#allocation8 + $0xa8] sm:$0xff]  ;;  %v326_v13 = vld [vmem:[#allocation8 + $0x190] sm:$0xff] }
  0x4a   :  { %478 = vmatpush.msrb.mxu3 %v385_v22  ;;  %419 = vmatpush.msrb.mxu0 %v316_v23  ;;  %v360_v45 = vld [vmem:[#allocation8 + $0x2a0] sm:$0xff]  ;;  %v361_v46 = vld [vmem:[#allocation8 + $0x2a8] sm:$0xff]  ;;  %v327_v14 = vld [vmem:[#allocation8 + $0x198] sm:$0xff] }
  0x4b   :  { %459 = vmatpush.msrb.mxu2 %v317_v24  ;;  %439 = vmatpush.msrb.mxu1 %v380_v25  ;;  %v292_v47 = vld [vmem:[#allocation8 + $0x80] sm:$0xff]  ;;  %v293_v48 = vld [vmem:[#allocation8 + $0x88] sm:$0xff]  ;;  %v394_v15 = vld [vmem:[#allocation8 + $0x3b0] sm:$0xff] }
  0x4c   :  { %479 = vmatpush.msrb.mxu3 %v381_v26  ;;  %420 = vmatpush.msrb.mxu0 %v312_v27  ;;  %v356_v49 = vld [vmem:[#allocation8 + $0x280] sm:$0xff]  ;;  %v357_v50 = vld [vmem:[#allocation8 + $0x288] sm:$0xff]  ;;  %v395_v16 = vld [vmem:[#allocation8 + $0x3b8] sm:$0xff] }
  0x4d   :  { %460 = vmatpush.msrb.mxu2 %v313_v28  ;;  %440 = vmatpush.msrb.mxu1 %v376_v29  ;;  %v288_v51 = vld [vmem:[#allocation8 + $0x60] sm:$0xff]  ;;  %v289_v52 = vld [vmem:[#allocation8 + $0x68] sm:$0xff]  ;;  %v322_v17 = vld [vmem:[#allocation8 + $0x170] sm:$0xff] }
  0x4e   :  { %480 = vmatpush.msrb.mxu3 %v377_v30  ;;  %421 = vmatpush.msrb.mxu0 %v308_v31  ;;  %v352_v53 = vld [vmem:[#allocation8 + $0x260] sm:$0xff]  ;;  %v353_v54 = vld [vmem:[#allocation8 + $0x268] sm:$0xff]  ;;  %v323_v18 = vld [vmem:[#allocation8 + $0x178] sm:$0xff] }
  0x4f   :  { %461 = vmatpush.msrb.mxu2 %v309_v32  ;;  %441 = vmatpush.msrb.mxu1 %v372_v33  ;;  %v284_v55 = vld [vmem:[#allocation8 + $0x40] sm:$0xff]  ;;  %v285_v56 = vld [vmem:[#allocation8 + $0x48] sm:$0xff]  ;;  %v390_v19 = vld [vmem:[#allocation8 + $0x390] sm:$0xff] }
  0x50   :  { %481 = vmatpush.msrb.mxu3 %v373_v34  ;;  %422 = vmatpush.msrb.mxu0 %v304_v35  ;;  %v348_v57 = vld [vmem:[#allocation8 + $0x240] sm:$0xff]  ;;  %v349_v58 = vld [vmem:[#allocation8 + $0x248] sm:$0xff]  ;;  %v391_v20 = vld [vmem:[#allocation8 + $0x398] sm:$0xff] }
  0x51   :  { %462 = vmatpush.msrb.mxu2 %v305_v36  ;;  %442 = vmatpush.msrb.mxu1 %v368_v37  ;;  %v280_v59 = vld [vmem:[#allocation8 + $0x20] sm:$0xff]  ;;  %v281_v60 = vld [vmem:[#allocation8 + $0x28] sm:$0xff]  ;;  %v318_v21 = vld [vmem:[#allocation8 + $0x150] sm:$0xff] }
  0x52   :  { %482 = vmatpush.msrb.mxu3 %v369_v38  ;;  %423 = vmatpush.msrb.mxu0 %v300_v39  ;;  %v344_v61 = vld [vmem:[#allocation8 + $0x220] sm:$0xff]  ;;  %v345_v62 = vld [vmem:[#allocation8 + $0x228] sm:$0xff]  ;;  %v319_v22 = vld [vmem:[#allocation8 + $0x158] sm:$0xff] }
  0x53   :  { %463 = vmatpush.msrb.mxu2 %v301_v40  ;;  %443 = vmatpush.msrb.mxu1 %v364_v41  ;;  %v276_v63 = vld [vmem:[#allocation8] sm:$0xff]  ;;  %v277_v0 = vld [vmem:[#allocation8 + $0x8] sm:$0xff]  ;;  %v314_v23 = vld [vmem:[#allocation8 + $0x130] sm:$0xff] }
  0x54   :  { %483 = vmatpush.msrb.mxu3 %v365_v42  ;;  %424 = vmatpush.msrb.mxu0 %v296_v43  ;;  %v340_v3 = vld [vmem:[#allocation8 + $0x200] sm:$0xff]  ;;  %v341_v4 = vld [vmem:[#allocation8 + $0x208] sm:$0xff]  ;;  %v315_v24 = vld [vmem:[#allocation8 + $0x138] sm:$0xff] }
  0x55   :  { %464 = vmatpush.msrb.mxu2 %v297_v44  ;;  %444 = vmatpush.msrb.mxu1 %v360_v45  ;;  %v310_v25 = vld [vmem:[#allocation8 + $0x110] sm:$0xff]  ;;  %v311_v27 = vld [vmem:[#allocation8 + $0x118] sm:$0xff] }
  0x56   :  { %484 = vmatpush.msrb.mxu3 %v361_v46  ;;  %425 = vmatpush.msrb.mxu0 %v292_v47  ;;  %v386_v26 = vld [vmem:[#allocation8 + $0x370] sm:$0xff]  ;;  %v387_v28 = vld [vmem:[#allocation8 + $0x378] sm:$0xff] }
  0x57   :  { %465 = vmatpush.msrb.mxu2 %v293_v48  ;;  %445 = vmatpush.msrb.mxu1 %v356_v49  ;;  %v306_v29 = vld [vmem:[#allocation8 + $0xf0] sm:$0xff]  ;;  %v307_v31 = vld [vmem:[#allocation8 + $0xf8] sm:$0xff] }
  0x58   :  { %485 = vmatpush.msrb.mxu3 %v357_v50  ;;  %426 = vmatpush.msrb.mxu0 %v288_v51  ;;  %v382_v30 = vld [vmem:[#allocation8 + $0x350] sm:$0xff]  ;;  %v383_v32 = vld [vmem:[#allocation8 + $0x358] sm:$0xff] }
  0x59   :  { %466 = vmatpush.msrb.mxu2 %v289_v52  ;;  %446 = vmatpush.msrb.mxu1 %v352_v53  ;;  %v302_v33 = vld [vmem:[#allocation8 + $0xd0] sm:$0xff]  ;;  %v303_v35 = vld [vmem:[#allocation8 + $0xd8] sm:$0xff] }
  0x5a   :  { %486 = vmatpush.msrb.mxu3 %v353_v54  ;;  %427 = vmatpush.msrb.mxu0 %v284_v55  ;;  %v378_v34 = vld [vmem:[#allocation8 + $0x330] sm:$0xff]  ;;  %v379_v36 = vld [vmem:[#allocation8 + $0x338] sm:$0xff] }
  0x5b   :  { %467 = vmatpush.msrb.mxu2 %v285_v56  ;;  %447 = vmatpush.msrb.mxu1 %v348_v57  ;;  %v298_v37 = vld [vmem:[#allocation8 + $0xb0] sm:$0xff]  ;;  %v299_v39 = vld [vmem:[#allocation8 + $0xb8] sm:$0xff] }
  0x5c   :  { %487 = vmatpush.msrb.mxu3 %v349_v58  ;;  %428 = vmatpush.msrb.mxu0 %v280_v59  ;;  %v374_v38 = vld [vmem:[#allocation8 + $0x310] sm:$0xff]  ;;  %v375_v40 = vld [vmem:[#allocation8 + $0x318] sm:$0xff] }
  0x5d   :  { %468 = vmatpush.msrb.mxu2 %v281_v60  ;;  %448 = vmatpush.msrb.mxu1 %v344_v61  ;;  %v294_v41 = vld [vmem:[#allocation8 + $0x90] sm:$0xff]  ;;  %v295_v43 = vld [vmem:[#allocation8 + $0x98] sm:$0xff] }
  0x5e   :  { %488 = vmatpush.msrb.mxu3 %v345_v62  ;;  %429 = vmatpush.msrb.mxu0 %v276_v63  ;;  %v370_v42 = vld [vmem:[#allocation8 + $0x2f0] sm:$0xff]  ;;  %v371_v44 = vld [vmem:[#allocation8 + $0x2f8] sm:$0xff] }
  0x5f   :  { %469 = vmatpush.msrb.mxu2 %v277_v0  ;;  %449 = vmatpush.msrb.mxu1 %v340_v3  ;;  %v290_v45 = vld [vmem:[#allocation8 + $0x70] sm:$0xff]  ;;  %v291_v47 = vld [vmem:[#allocation8 + $0x78] sm:$0xff] }
  0x60   :  { %494 = vmatpush.msra.mxu0 %v338_v1  ;;  %489 = vmatpush.msrb.mxu3 %v341_v4  ;;  %v366_v46 = vld [vmem:[#allocation8 + $0x2d0] sm:$0xff]  ;;  %v367_v48 = vld [vmem:[#allocation8 + $0x2d8] sm:$0xff] }
  0x61   :  { %534 = vmatpush.msra.mxu2 %v339_v2  ;;  %514 = vmatpush.msra.mxu1 %v402_v7  ;;  %v286_v49 = vld [vmem:[#allocation8 + $0x50] sm:$0xff]  ;;  %v287_v51 = vld [vmem:[#allocation8 + $0x58] sm:$0xff] }
  0x62   :  { %495 = vmatpush.msra.mxu0 %v334_v5  ;;  %554 = vmatpush.msra.mxu3 %v403_v8  ;;  %v362_v50 = vld [vmem:[#allocation8 + $0x2b0] sm:$0xff]  ;;  %v363_v52 = vld [vmem:[#allocation8 + $0x2b8] sm:$0xff] }
  0x63   :  { %535 = vmatpush.msra.mxu2 %v335_v6  ;;  %515 = vmatpush.msra.mxu1 %v398_v11  ;;  %v282_v53 = vld [vmem:[#allocation8 + $0x30] sm:$0xff]  ;;  %v283_v55 = vld [vmem:[#allocation8 + $0x38] sm:$0xff] }
  0x64   :  { %496 = vmatpush.msra.mxu0 %v330_v9  ;;  %555 = vmatpush.msra.mxu3 %v399_v12  ;;  %v358_v54 = vld [vmem:[#allocation8 + $0x290] sm:$0xff]  ;;  %v359_v56 = vld [vmem:[#allocation8 + $0x298] sm:$0xff] }
  0x65   :  { %536 = vmatpush.msra.mxu2 %v331_v10  ;;  %516 = vmatpush.msra.mxu1 %v394_v15  ;;  %v278_v57 = vld [vmem:[#allocation8 + $0x10] sm:$0xff]  ;;  %v279_v59 = vld [vmem:[#allocation8 + $0x18] sm:$0xff] }
  0x66   :  { %497 = vmatpush.msra.mxu0 %v326_v13  ;;  %556 = vmatpush.msra.mxu3 %v395_v16  ;;  %v354_v58 = vld [vmem:[#allocation8 + $0x270] sm:$0xff]  ;;  %v355_v60 = vld [vmem:[#allocation8 + $0x278] sm:$0xff] }
  0x67   :  { %537 = vmatpush.msra.mxu2 %v327_v14  ;;  %517 = vmatpush.msra.mxu1 %v390_v19  ;;  %v350_v61 = vld [vmem:[#allocation8 + $0x250] sm:$0xff]  ;;  %v351_v62 = vld [vmem:[#allocation8 + $0x258] sm:$0xff] }
  0x68   :  { %498 = vmatpush.msra.mxu0 %v322_v17  ;;  %557 = vmatpush.msra.mxu3 %v391_v20  ;;  %v346_v63 = vld [vmem:[#allocation8 + $0x230] sm:$0xff]  ;;  %v347_v0 = vld [vmem:[#allocation8 + $0x238] sm:$0xff] }
  0x69   :  { %538 = vmatpush.msra.mxu2 %v323_v18  ;;  %518 = vmatpush.msra.mxu1 %v386_v26  ;;  %v342_v1 = vld [vmem:[#allocation8 + $0x210] sm:$0xff]  ;;  %v343_v2 = vld [vmem:[#allocation8 + $0x218] sm:$0xff] }
  0x6a   :  { %499 = vmatpush.msra.mxu0 %v318_v21  ;;  %558 = vmatpush.msra.mxu3 %v387_v28  ;;  %v180_v3 = vld [vmem:[#allocation7] sm:$0x3]  ;;  %v596_v18 = vld [vmem:[#allocation11 + $0x70] sm:$0xff]  ;;  %v595_v21 = vld [vmem:[#allocation11 + $0x68] sm:$0xff] }
  0x6b   :  { %539 = vmatpush.msra.mxu2 %v319_v22  ;;  %519 = vmatpush.msra.mxu1 %v382_v30  ;;  %v182_v4 = vperm.slane %v180_v3, 0  ;;  %v183_v9 = vperm.slane %v180_v3, 1  ;;  %v597_v14 = vld [vmem:[#allocation11 + $0x78] sm:$0xff]  ;;  %v628_v19 = vld [vmem:[#allocation11 + $0x170] sm:$0xff]  ;;  %v627_v22 = vld [vmem:[#allocation11 + $0x168] sm:$0xff] }
  0x6c   :  { %500 = vmatpush.msra.mxu0 %v314_v23  ;;  %559 = vmatpush.msra.mxu3 %v383_v32  ;;  %v629_v15 = vld [vmem:[#allocation11 + $0x178] sm:$0xff]  ;;  %v626_v28 = vld [vmem:[#allocation11 + $0x160] sm:$0xff]  ;;  %v592_v30 = vld [vmem:[#allocation11 + $0x50] sm:$0xff] }
  0x6d   :  { %540 = vmatpush.msra.mxu2 %v315_v24  ;;  %520 = vmatpush.msra.mxu1 %v378_v34  ;;  %v594_v24 = vld [vmem:[#allocation11 + $0x60] sm:$0xff]  ;;  %v593_v26 = vld [vmem:[#allocation11 + $0x58] sm:$0xff]  ;;  %v591_v34 = vld [vmem:[#allocation11 + $0x48] sm:$0xff] }
  0x6e   :  { %501 = vmatpush.msra.mxu0 %v310_v25  ;;  %560 = vmatpush.msra.mxu3 %v379_v36  ;;  %v613_v25 = vld [vmem:[#allocation11 + $0xf8] sm:$0xff]  ;;  %v590_v36 = vld [vmem:[#allocation11 + $0x40] sm:$0xff] }
  0x6f   :  { %541 = vmatpush.msra.mxu2 %v311_v27  ;;  %521 = vmatpush.msra.mxu1 %v374_v38  ;;  %v612_v27 = vld [vmem:[#allocation11 + $0xf0] sm:$0xff]  ;;  %v625_v32 = vld [vmem:[#allocation11 + $0x158] sm:$0xff] }
  0x70   :  { %502 = vmatpush.msra.mxu0 %v306_v29  ;;  %561 = vmatpush.msra.mxu3 %v375_v40  ;;  %v645_v29 = vld [vmem:[#allocation11 + $0x1f8] sm:$0xff]  ;;  %v588_v40 = vld [vmem:[#allocation11 + $0x30] sm:$0xff] }
  0x71   :  { %542 = vmatpush.msra.mxu2 %v307_v31  ;;  %522 = vmatpush.msra.mxu1 %v370_v42  ;;  %v611_v31 = vld [vmem:[#allocation11 + $0xe8] sm:$0xff]  ;;  %v589_v38 = vld [vmem:[#allocation11 + $0x38] sm:$0xff]  ;;  %v624_v42 = vld [vmem:[#allocation11 + $0x150] sm:$0xff] }
  0x72   :  { %503 = vmatpush.msra.mxu0 %v302_v33  ;;  %562 = vmatpush.msra.mxu3 %v371_v44  ;;  %v644_v33 = vld [vmem:[#allocation11 + $0x1f0] sm:$0xff]  ;;  %v587_v44 = vld [vmem:[#allocation11 + $0x28] sm:$0xff]  ;;  %v637_v3 = vld [vmem:[#allocation11 + $0x1b8] sm:$0xff] }
  0x73   :  { %543 = vmatpush.msra.mxu2 %v303_v35  ;;  %523 = vmatpush.msra.mxu1 %v366_v46  ;;  %v610_v35 = vld [vmem:[#allocation11 + $0xe0] sm:$0xff]  ;;  %v623_v46 = vld [vmem:[#allocation11 + $0x148] sm:$0xff] }
  0x74   :  { %504 = vmatpush.msra.mxu0 %v298_v37  ;;  %563 = vmatpush.msra.mxu3 %v367_v48  ;;  %v609_v37 = vld [vmem:[#allocation11 + $0xd8] sm:$0xff]  ;;  %v586_v48 = vld [vmem:[#allocation11 + $0x20] sm:$0xff] }
  0x75   :  { %544 = vmatpush.msra.mxu2 %v299_v39  ;;  %524 = vmatpush.msra.mxu1 %v362_v50  ;;  %v608_v39 = vld [vmem:[#allocation11 + $0xd0] sm:$0xff]  ;;  %v622_v50 = vld [vmem:[#allocation11 + $0x140] sm:$0xff] }
  0x76   :  { %505 = vmatpush.msra.mxu0 %v294_v41  ;;  %564 = vmatpush.msra.mxu3 %v363_v52  ;;  %v607_v41 = vld [vmem:[#allocation11 + $0xc8] sm:$0xff]  ;;  %v585_v52 = vld [vmem:[#allocation11 + $0x18] sm:$0xff] }
  0x77   :  { %545 = vmatpush.msra.mxu2 %v295_v43  ;;  %525 = vmatpush.msra.mxu1 %v358_v54  ;;  %v643_v43 = vld [vmem:[#allocation11 + $0x1e8] sm:$0xff]  ;;  %v621_v54 = vld [vmem:[#allocation11 + $0x138] sm:$0xff] }
  0x78   :  { %506 = vmatpush.msra.mxu0 %v290_v45  ;;  %565 = vmatpush.msra.mxu3 %v359_v56  ;;  %v606_v45 = vld [vmem:[#allocation11 + $0xc0] sm:$0xff]  ;;  %v584_v56 = vld [vmem:[#allocation11 + $0x10] sm:$0xff] }
  0x79   :  { %546 = vmatpush.msra.mxu2 %v291_v47  ;;  %526 = vmatpush.msra.mxu1 %v354_v58  ;;  %v642_v47 = vld [vmem:[#allocation11 + $0x1e0] sm:$0xff]  ;;  %v620_v58 = vld [vmem:[#allocation11 + $0x130] sm:$0xff] }
  0x7a   :  { %507 = vmatpush.msra.mxu0 %v286_v49  ;;  %566 = vmatpush.msra.mxu3 %v355_v60  ;;  %v605_v49 = vld [vmem:[#allocation11 + $0xb8] sm:$0xff]  ;;  %v583_v60 = vld [vmem:[#allocation11 + $0x8] sm:$0xff] }
  0x7b   :  { %547 = vmatpush.msra.mxu2 %v287_v51  ;;  %527 = vmatpush.msra.mxu1 %v350_v61  ;;  %v641_v51 = vld [vmem:[#allocation11 + $0x1d8] sm:$0xff]  ;;  %v602_v61 = vld [vmem:[#allocation11 + $0xa0] sm:$0xff] }
  0x7c   :  { %508 = vmatpush.msra.mxu0 %v282_v53  ;;  %567 = vmatpush.msra.mxu3 %v351_v62  ;;  %v604_v53 = vld [vmem:[#allocation11 + $0xb0] sm:$0xff]  ;;  %v619_v62 = vld [vmem:[#allocation11 + $0x128] sm:$0xff] }
  0x7d   :  { %548 = vmatpush.msra.mxu2 %v283_v55  ;;  %528 = vmatpush.msra.mxu1 %v346_v63  ;;  %v640_v55 = vld [vmem:[#allocation11 + $0x1d0] sm:$0xff]  ;;  %v638_v63 = vld [vmem:[#allocation11 + $0x1c0] sm:$0xff] }
  0x7e   :  { %509 = vmatpush.msra.mxu0 %v278_v57  ;;  %568 = vmatpush.msra.mxu3 %v347_v0  ;;  %v603_v57 = vld [vmem:[#allocation11 + $0xa8] sm:$0xff]  ;;  %v582_v0 = vld [vmem:[#allocation11] sm:$0xff] }
  0x7f   :  { %549 = vmatpush.msra.mxu2 %v279_v59  ;;  %529 = vmatpush.msra.mxu1 %v342_v1  ;;  %v639_v59 = vld [vmem:[#allocation11 + $0x1c8] sm:$0xff]  ;;  %v601_v1 = vld [vmem:[#allocation11 + $0x98] sm:$0xff] }
  0x80   :  { %569 = vmatpush.msra.mxu3 %v343_v2  ;;  %v618_v2 = vld [vmem:[#allocation11 + $0x120] sm:$0xff] }
  0xba   :  { %v209_v5 = vpop.f32.mrf.mxu0 }
  0xbb   :  { %v210_v6 = vadd.f32 %v209_v5, %v182_v4  ;;  %v600_v4 = vld [vmem:[#allocation11 + $0x90] sm:$0xff]  ;;  %v617_v5 = vld [vmem:[#allocation11 + $0x118] sm:$0xff] }
  0xbc   :  { %v229_v7 = vpop.f32.mrf.mxu1 }
  0xbd   :  { %v230_v8 = vadd.f32 %v229_v7, %v210_v6  ;;  %v636_v6 = vld [vmem:[#allocation11 + $0x1b0] sm:$0xff]  ;;  %v599_v7 = vld [vmem:[#allocation11 + $0x88] sm:$0xff] }
  0xbf   :  { %v272_v10 = vmul.f32 0.2, %v230_v8 }
  0xc1   :  { %v249_v11 = vpop.f32.mrf.mxu2  ;;  %v274_v12 = vmax.f32 %v230_v8, %v272_v10  ;;  %v616_v8 = vld [vmem:[#allocation11 + $0x110] sm:$0xff]  ;;  %v598_v10 = vld [vmem:[#allocation11 + $0x80] sm:$0xff] }
  0xc2   :  { %v250_v13 = vadd.f32 %v249_v11, %v183_v9  ;;  %v635_v9 = vld [vmem:[#allocation11 + $0x1a8] sm:$0xff] }
  0xc3   :  { %v269_v16 = vpop.f32.mrf.mxu3  ;;  %430 = vmatmul.f32.vlgmr.msrb.gmra.mxu0 %v274_v12  ;;  %470 = vmatmul.f32.vlgmr.msrb.gmra.mxu2 %v274_v12  ;;  %v615_v11 = vld [vmem:[#allocation11 + $0x108] sm:$0xff] }
  0xc4   :  { %v270_v17 = vadd.f32 %v269_v16, %v250_v13  ;;  %650 = vmatpush.msrb.mxu0 %v597_v14  ;;  %690 = vmatpush.msrb.mxu2 %v629_v15  ;;  %v614_v13 = vld [vmem:[#allocation11 + $0x100] sm:$0xff]  ;;  %v633_v14 = vld [vmem:[#allocation11 + $0x198] sm:$0xff]  ;;  %v632_v15 = vld [vmem:[#allocation11 + $0x190] sm:$0xff] }
  0xc5   :  { %v631_v16 = vld [vmem:[#allocation11 + $0x188] sm:$0xff] }
  0xc6   :  { %v273_v20 = vmul.f32 0.2, %v270_v17  ;;  %651 = vmatpush.msrb.mxu0 %v596_v18  ;;  %691 = vmatpush.msrb.mxu2 %v628_v19  ;;  %v404_v18 = vld [vmem:[#allocation10] sm:$0xf] }
  0xc8   :  { %v275_v23 = vmax.f32 %v270_v17, %v273_v20  ;;  %652 = vmatpush.msrb.mxu0 %v595_v21  ;;  %692 = vmatpush.msrb.mxu2 %v627_v22  ;;  %v630_v17 = vld [vmem:[#allocation11 + $0x180] sm:$0xff]  ;;  %v406_v20 = vperm.slane %v404_v18, 0 }
  0xca   :  { %450 = vmatmul.f32.vlgmr.msrb.gmra.mxu1 %v275_v23  ;;  %490 = vmatmul.f32.vlgmr.msrb.gmra.mxu3 %v275_v23 }
  0xcb   :  { %653 = vmatpush.msrb.mxu0 %v594_v24  ;;  %670 = vmatpush.msrb.mxu1 %v613_v25  ;;  %v407_v25 = vperm.slane %v404_v18, 1 }
  0xcc   :  { %510 = vmatmul.f32.vlgmr.msra.gmra.mxu0 %v274_v12  ;;  %550 = vmatmul.f32.vlgmr.msra.gmra.mxu2 %v274_v12  ;;  %v634_v12 = vld [vmem:[#allocation11 + $0x1a0] sm:$0xff] }
  0xcd   :  { %654 = vmatpush.msrb.mxu0 %v593_v26  ;;  %671 = vmatpush.msrb.mxu1 %v612_v27  ;;  %v408_v27 = vperm.slane %v404_v18, 2 }
  0xce   :  { %693 = vmatpush.msrb.mxu2 %v626_v28  ;;  %710 = vmatpush.msrb.mxu3 %v645_v29 }
  0xcf   :  { %655 = vmatpush.msrb.mxu0 %v592_v30  ;;  %672 = vmatpush.msrb.mxu1 %v611_v31 }
  0xd0   :  { %694 = vmatpush.msrb.mxu2 %v625_v32  ;;  %711 = vmatpush.msrb.mxu3 %v644_v33 }
  0xd1   :  { %656 = vmatpush.msrb.mxu0 %v591_v34  ;;  %673 = vmatpush.msrb.mxu1 %v610_v35 }
  0xd2   :  { %530 = vmatmul.f32.vlgmr.msra.gmra.mxu1 %v275_v23  ;;  %570 = vmatmul.f32.vlgmr.msra.gmra.mxu3 %v275_v23 }
  0xd3   :  { %657 = vmatpush.msrb.mxu0 %v590_v36  ;;  %674 = vmatpush.msrb.mxu1 %v609_v37  ;;  %v409_v37 = vperm.slane %v404_v18, 3 }
  0xd4   :  { %695 = vmatpush.msrb.mxu2 %v624_v42  ;;  %712 = vmatpush.msrb.mxu3 %v643_v43 }
  0xd5   :  { %658 = vmatpush.msrb.mxu0 %v589_v38  ;;  %675 = vmatpush.msrb.mxu1 %v608_v39 }
  0xd6   :  { %696 = vmatpush.msrb.mxu2 %v623_v46  ;;  %713 = vmatpush.msrb.mxu3 %v642_v47  ;;  %v765_v47 = vld [vmem:[%s1029_s6] ss:$0 sm:$0xff] }
  0xd7   :  { %659 = vmatpush.msrb.mxu0 %v588_v40  ;;  %676 = vmatpush.msrb.mxu1 %v607_v41 }
  0xd8   :  { %697 = vmatpush.msrb.mxu2 %v622_v50  ;;  %714 = vmatpush.msrb.mxu3 %v641_v51 }
  0xd9   :  { %660 = vmatpush.msrb.mxu0 %v587_v44  ;;  %677 = vmatpush.msrb.mxu1 %v606_v45 }
  0xda   :  { %698 = vmatpush.msrb.mxu2 %v621_v54  ;;  %715 = vmatpush.msrb.mxu3 %v640_v55 }
  0xdb   :  { %661 = vmatpush.msrb.mxu0 %v586_v48  ;;  %678 = vmatpush.msrb.mxu1 %v605_v49 }
  0xdc   :  { %699 = vmatpush.msrb.mxu2 %v620_v58  ;;  %716 = vmatpush.msrb.mxu3 %v639_v59 }
  0xdd   :  { %662 = vmatpush.msrb.mxu0 %v585_v52  ;;  %679 = vmatpush.msrb.mxu1 %v604_v53 }
  0xde   :  { %700 = vmatpush.msrb.mxu2 %v619_v62  ;;  %717 = vmatpush.msrb.mxu3 %v638_v63 }
  0xdf   :  { %663 = vmatpush.msrb.mxu0 %v584_v56  ;;  %680 = vmatpush.msrb.mxu1 %v603_v57 }
  0xe0   :  { %701 = vmatpush.msrb.mxu2 %v618_v2  ;;  %718 = vmatpush.msrb.mxu3 %v637_v3 }
  0xe1   :  { %664 = vmatpush.msrb.mxu0 %v583_v60  ;;  %681 = vmatpush.msrb.mxu1 %v602_v61 }
  0xe2   :  { %702 = vmatpush.msrb.mxu2 %v617_v5  ;;  %719 = vmatpush.msrb.mxu3 %v636_v6 }
  0xe3   :  { %665 = vmatpush.msrb.mxu0 %v582_v0  ;;  %682 = vmatpush.msrb.mxu1 %v601_v1 }
  0xe4   :  { %703 = vmatpush.msrb.mxu2 %v616_v8  ;;  %720 = vmatpush.msrb.mxu3 %v635_v9 }
  0xe5   :  { %683 = vmatpush.msrb.mxu1 %v600_v4 }
  0xe6   :  { %704 = vmatpush.msrb.mxu2 %v615_v11  ;;  %721 = vmatpush.msrb.mxu3 %v634_v12 }
  0xe7   :  { %684 = vmatpush.msrb.mxu1 %v599_v7 }
  0xe8   :  { %705 = vmatpush.msrb.mxu2 %v614_v13  ;;  %722 = vmatpush.msrb.mxu3 %v633_v14 }
  0xe9   :  { %685 = vmatpush.msrb.mxu1 %v598_v10 }
  0xea   :  { %723 = vmatpush.msrb.mxu3 %v632_v15 }
  0xec   :  { %724 = vmatpush.msrb.mxu3 %v631_v16 }
  0xee   :  { %725 = vmatpush.msrb.mxu3 %v630_v17 }
 0x140   :  { %v431_v19 = vpop.f32.mrf.mxu0 }
 0x141   :  { %v432_v21 = vadd.f32 %v431_v19, %v406_v20 }
 0x146   :  { %v471_v23 = vpop.f32.mrf.mxu2 }
 0x147   :  { %v451_v22 = vpop.f32.mrf.mxu1  ;;  %v472_v30 = vadd.f32 %v471_v23, %v407_v25 }
 0x148   :  { %v452_v24 = vadd.f32 %v451_v22, %v432_v21 }
 0x149   :  { %v511_v28 = vpop.f32.mrf.mxu0 }
 0x14a   :  { %v574_v26 = vmul.f32 0.2, %v452_v24  ;;  %v512_v32 = vadd.f32 %v511_v28, %v408_v27 }
 0x14c   :  { %v578_v29 = vmax.f32 %v452_v24, %v574_v26 }
 0x14d   :  { %v491_v31 = vpop.f32.mrf.mxu3 }
 0x14e   :  { %v492_v33 = vadd.f32 %v491_v31, %v472_v30  ;;  %666 = vmatmul.f32.vlgmr.msrb.gmra.mxu0 %v578_v29 }
 0x14f   :  { %v531_v34 = vpop.f32.mrf.mxu1  ;;  %v551_v38 = vpop.f32.mrf.mxu2 }
 0x150   :  { %v575_v35 = vmul.f32 0.2, %v492_v33  ;;  %v532_v36 = vadd.f32 %v531_v34, %v512_v32  ;;  %v552_v42 = vadd.f32 %v551_v38, %v409_v37 }
 0x152   :  { %v579_v39 = vmax.f32 %v492_v33, %v575_v35  ;;  %v576_v40 = vmul.f32 0.2, %v532_v36 }
 0x154   :  { %v580_v41 = vmax.f32 %v532_v36, %v576_v40  ;;  %686 = vmatmul.f32.vlgmr.msrb.gmra.mxu1 %v579_v39 }
 0x155   :  { %v571_v43 = vpop.f32.mrf.mxu3 }
 0x156   :  { %v572_v44 = vadd.f32 %v571_v43, %v552_v42  ;;  %706 = vmatmul.f32.vlgmr.msrb.gmra.mxu2 %v580_v41 }
 0x158   :  { %v577_v45 = vmul.f32 0.2, %v572_v44 }
 0x15a   :  { %v581_v46 = vmax.f32 %v572_v44, %v577_v45 }
 0x15c   :  { %726 = vmatmul.f32.vlgmr.msrb.gmra.mxu3 %v581_v46 }
 0x1cb   :  { %v667_v48 = vpop.f32.mrf.mxu0 }
 0x1cc   :  { %v668_v50 = vadd.f32 %v765_v47, %v667_v48 }
 0x1d1   :  { %v687_v49 = vpop.f32.mrf.mxu1 }
 0x1d2   :  { %v688_v52 = vadd.f32 %v687_v49, %v668_v50 }
 0x1d9   :  { %v707_v51 = vpop.f32.mrf.mxu2 }
 0x1da   :  { %v708_v53 = vadd.f32 %v707_v51, %v688_v52 }
 0x1df   :  { %v727_v54 = vpop.f32.mrf.mxu3 }
 0x1e0   :  { %v728_v55 = vadd.f32 %v727_v54, %v708_v53 }
 0x1e2   :  { %766 = vtanh.f32 %v728_v55 }
 0x1e8   :  { %v767_v56 = vpop.eup %766 }
 0x1e9   :  { %731 = vst [vmem:[#allocation13] sm:$0x3] %v767_v56 }
 0x1ea   :  { %742 = dma.vmem_to_hbm [thread:$0]  %s738_s11, 32, %s740_s14, [#allocation4]  }
 0x1eb   :  { %944 = dma.done.wait [#allocation4], 32  }
 0x1ec   :  { %945 = vsyncadd [#allocation4], 4294967264 }
 0x1ed   :  { %747 = vsyncpa [#allocation3], 1 }
 0x1ee   :  { %748 = vsyncpa [#allocation6], 1 }
 0x1ef   :  { %749 = vsyncpa [#allocation9], 1 }
 0x1f0   :  { %750 = vsyncpa [#allocation12], 1 }
 0x1f1   :  { %751 = vsyncpa [#allocation4], 1 }

</bundles_post_ra>
